<compile_context>
chip_gen: v7x
topology: tpu7x:2x2x1
jax: 0.10.0
libtpu: 0.0.40
codegen_flags: <defaults>
</compile_context>

<pallas_src>
import jax
import jax.numpy as jnp
from jax.experimental import pallas as pl
from jax.experimental.pallas import tpu as pltpu


def _ae2_kernel(x_ref,
                w1_ref, b1_ref,   # encoder: num_inputs -> 20
                w2_ref, b2_ref,   # encoder: 20 -> 2
                w3_ref, b3_ref,   # decoder: 2 -> 20
                w4_ref, b4_ref,   # decoder: 20 -> num_inputs
                code_ref, recon_ref):
    x = x_ref[...]                                    # [TB, num_inputs] (f32 or bf16)

    # ---- Encoder: Linear -> ReLU -> Linear ----
    h = jnp.dot(x, w1_ref[...], preferred_element_type=jnp.float32) + b1_ref[...]
    h = jnp.maximum(h, 0.0)                           # [TB, 20] f32
    code = jnp.dot(h, w2_ref[...], preferred_element_type=jnp.float32) + b2_ref[...]
    code_ref[...] = code.astype(code_ref.dtype)       # [TB, 2]

    # ---- Decoder: Linear -> ReLU -> Linear -> ReLU ----
    # K=2 contraction done on the VPU as an outer-product sum: an MXU pass
    # with K=2 costs full latency for ~40 FLOPs/row, while these vmuls
    # co-issue for free next to the two real matmuls.
    w3 = w3_ref[...]                                  # [2, 20] f32
    d = code[:, 0:1] * w3[0:1, :] + code[:, 1:2] * w3[1:2, :] + b3_ref[...]
    d = jnp.maximum(d, 0.0)                           # [TB, 20] f32
    d = d.astype(w4_ref.dtype)                        # bf16 when the caller runs bf16
    r = jnp.dot(d, w4_ref[...], preferred_element_type=jnp.float32) + b4_ref[...]
    r = jnp.maximum(r, 0.0)
    recon_ref[...] = r.astype(recon_ref.dtype)        # [TB, num_inputs]


def _vmem_budget_bytes():
    """Generation-aware VMEM budget: ~3/4 of per-core capacity.
    v7x (64 MiB)  -> ~48 MiB; v5e/v6e (128 MiB) -> ~96 MiB.
    Falls back to a conservative 48 MiB if the query is unavailable."""
    try:
        cap = int(pltpu.get_tpu_info().vmem_capacity_bytes)
    except Exception:
        cap = 64 * 1024 * 1024
    return (cap * 3) // 4


def _pick_batch_tile(batch, num_inputs, x_itemsize, recon_itemsize,
                     tile_budget, sublane, min_steps):
    """Largest batch tile whose pipelined x/recon buffers fit `tile_budget`
    (the per-generation VMEM budget minus resident weights), softly capped so
    the grid has >= `min_steps` iterations (pipelining + v7x core sharding)."""
    per_row = (2 * num_inputs * x_itemsize        # x tile, double buffered
               + 2 * num_inputs * recon_itemsize  # recon tile, double buffered
               + 2 * 2 * 4                        # code tile, double buffered
               + 2 * 20 * 4)                      # h / d intermediates (one copy)
    tb = max(sublane, tile_budget // max(per_row, 1))
    # Soft-guarantee >= min_steps grid iterations (never below one sublane row
    # group for tiny batches).
    tb = min(tb, max(sublane, -(-batch // min_steps)))
    tb = max(sublane, (tb // sublane) * sublane)
    return int(tb)


def autoencoder_2_forward(x, params, *, recon_dtype=None, batch_tile=None,
                          min_grid_steps=4):
    """Full autoencoder_2 forward in a single batch-tiled Pallas kernel.

    x: [batch, num_inputs] float32 or bfloat16 (no wrapper cast is performed;
       pass bf16 x to get the halved-HBM-read path).
    params: dict with w1,b1,w2,b2,w3,b3,w4,b4 (weights [in, out]; biases [1, out]).
    recon_dtype: dtype of the reconstruction output (default: x.dtype).
    Returns (code [batch, 2] f32, recon [batch, num_inputs] recon_dtype).
    """
    batch, num_inputs = x.shape
    recon_dtype = x.dtype if recon_dtype is None else jnp.dtype(recon_dtype)

    p = dict(params)
    # Match the two big-matmul weights to x.dtype. These are resident and tiny
    # relative to the per-batch x/recon traffic, so this cast is essentially
    # free; x itself is never cast in the wrapper (that would double its HBM
    # traffic). Biases and the tiny 20<->2 layers stay f32.
    if p["w1"].dtype != x.dtype:
        p["w1"] = p["w1"].astype(x.dtype)
    if p["w4"].dtype != x.dtype:
        p["w4"] = p["w4"].astype(x.dtype)

    args = (x,
            p["w1"], p["b1"], p["w2"], p["b2"],
            p["w3"], p["b3"], p["w4"], p["b4"])

    # bf16 min tile is (16, 128); f32 is (8, 128).
    any_bf16 = (x.dtype == jnp.bfloat16) or (recon_dtype == jnp.bfloat16)
    sublane = 16 if any_bf16 else 8

    vmem_budget = _vmem_budget_bytes()
    # Assume double-buffered residents when budgeting (safe if the
    # single-buffer request below falls back).
    resident_bytes = 2 * sum(int(a.size) * a.dtype.itemsize for a in args[1:])

    if batch_tile is None:
        tb = _pick_batch_tile(batch, num_inputs,
                              x.dtype.itemsize, jnp.dtype(recon_dtype).itemsize,
                              vmem_budget - resident_bytes, sublane,
                              min_grid_steps)
    else:
        tb = int(batch_tile)
    grid = (pl.cdiv(batch, tb),)

    x_spec = pl.BlockSpec((tb, num_inputs), lambda i: (i, 0))
    out_specs = (
        pl.BlockSpec((tb, 2), lambda i: (i, 0)),
        pl.BlockSpec((tb, num_inputs), lambda i: (i, 0)),
    )
    out_shape = (
        jax.ShapeDtypeStruct((batch, 2), jnp.float32),
        jax.ShapeDtypeStruct((batch, num_inputs), recon_dtype),
    )

    flops = 2 * batch * (num_inputs * 20 + 20 * 2 + 2 * 20 + 20 * num_inputs)
    bytes_accessed = (sum(int(a.size) * a.dtype.itemsize for a in args)
                      + batch * 2 * 4
                      + batch * num_inputs * jnp.dtype(recon_dtype).itemsize)

    def _resident_spec(a, single_buffer):
        # Full-array block, constant index_map: DMA'd once, resident in VMEM
        # for every batch tile. Single-buffered when supported (the block
        # never changes, so a second buffer is pure VMEM waste).
        nd = a.ndim
        if single_buffer:
            return pl.BlockSpec(a.shape, lambda i, _nd=nd: (0,) * _nd,
                                pipeline_mode=pl.Buffered(1))
        return pl.BlockSpec(a.shape, lambda i, _nd=nd: (0,) * _nd)

    def _build_and_call(single_buffer_weights):
        in_specs = [x_spec] + [_resident_spec(a, single_buffer_weights)
                               for a in args[1:]]
        return pl.pallas_call(
            _ae2_kernel,
            grid=grid,
            out_shape=out_shape,
            in_specs=in_specs,
            out_specs=out_specs,
            compiler_params=pltpu.CompilerParams(
                # Batch tiles are independent -> shard across TCs on v7x.
                dimension_semantics=("parallel",),
                # Explicit limit matching the per-generation budget used for
                # tile sizing (instead of the default scoped-VMEM limit).
                vmem_limit_bytes=int(vmem_budget),
            ),
            cost_estimate=pl.CostEstimate(
                flops=flops, transcendentals=0, bytes_accessed=bytes_accessed),
        )(*args)

    try:
        return _build_and_call(True)
    except Exception:
        # Older jax versions may reject pipeline_mode=pl.Buffered(1); fall back
        # to default (double) buffering of the resident weights.
        return _build_and_call(False)


def xavier_uniform(key, fan_out, fan_in, dtype=jnp.float32):
    """Match nn.init.xavier_uniform_ on a PyTorch weight [out, in], then
    transpose to [in, out] for the kernel's `x @ W` convention."""
    bound = jnp.sqrt(6.0 / (fan_in + fan_out))
    w_torch_layout = jax.random.uniform(
        key, (fan_out, fan_in), dtype=dtype, minval=-bound, maxval=bound)
    return jnp.transpose(w_torch_layout)  # -> [in, out]


def init_autoencoder_2_params(key, num_inputs):
    k1, k2, k3, k4 = jax.random.split(key, 4)
    return {
        # Encoder
        "w1": xavier_uniform(k1, 20, num_inputs),          # [num_inputs, 20]
        "b1": jnp.full((1, 20), 0.01, jnp.float32),
        "w2": xavier_uniform(k2, 2, 20),                   # [20, 2]
        "b2": jnp.full((1, 2), 0.01, jnp.float32),
        # Decoder
        "w3": xavier_uniform(k3, 20, 2),                   # [2, 20]
        "b3": jnp.full((1, 20), 0.01, jnp.float32),
        "w4": xavier_uniform(k4, num_inputs, 20),          # [20, num_inputs]
        "b4": jnp.full((1, num_inputs), 0.01, jnp.float32),
    }


def reference_forward(x, p):
    """Pure-JAX f32 reference (matches the PyTorch module)."""
    h = jnp.maximum(jnp.dot(x, p["w1"], preferred_element_type=jnp.float32) + p["b1"], 0.0)
    code = jnp.dot(h, p["w2"], preferred_element_type=jnp.float32) + p["b2"]
    d = jnp.maximum(code @ p["w3"] + p["b3"], 0.0)
    recon = jnp.maximum(jnp.dot(d, p["w4"], preferred_element_type=jnp.float32) + p["b4"], 0.0)
    return code, recon


def reference_forward_bf16(x_bf16, p):
    """Pure-JAX reference for the bf16-in / bf16-out, f32-accumulate path."""
    w1 = p["w1"].astype(jnp.bfloat16)
    w4 = p["w4"].astype(jnp.bfloat16)
    h = jnp.maximum(jnp.dot(x_bf16, w1, preferred_element_type=jnp.float32) + p["b1"], 0.0)
    code = jnp.dot(h, p["w2"], preferred_element_type=jnp.float32) + p["b2"]
    d = jnp.maximum(code @ p["w3"] + p["b3"], 0.0)
    recon = jnp.maximum(
        jnp.dot(d.astype(jnp.bfloat16), w4, preferred_element_type=jnp.float32) + p["b4"], 0.0)
    return code, recon.astype(jnp.bfloat16)


if __name__ == "__main__":
    key = jax.random.PRNGKey(0)
    k_params, k_x = jax.random.split(key)

    batch = 256       # small, but several batch tiles so the pipeline is exercised
    num_inputs = 128  # lane-dense x / recon (real BERMUDA gene counts are >= 128)

    params = init_autoencoder_2_params(k_params, num_inputs)
    x = jax.random.normal(k_x, (batch, num_inputs), dtype=jnp.float32)

    # --- f32 path (exact module semantics), forced small tile -> grid of 4 ---
    code, recon = autoencoder_2_forward(x, params, batch_tile=64)
    code = jax.block_until_ready(code)
    recon = jax.block_until_ready(recon)
    code_ref, recon_ref = reference_forward(x, params)
    assert code.shape == (batch, 2) and recon.shape == (batch, num_inputs)
    assert recon.dtype == jnp.float32
    assert jnp.allclose(code, code_ref, atol=1e-4, rtol=1e-4)
    assert jnp.allclose(recon, recon_ref, atol=1e-4, rtol=1e-4)

    # --- bf16 path: caller hands in bf16 x (no wrapper cast), bf16 recon out,
    #     auto tile (>= 4 grid steps, 16-row sublane alignment) ---
    x_bf16 = x.astype(jnp.bfloat16)
    code_bf, recon_bf = autoencoder_2_forward(x_bf16, params,
                                              recon_dtype=jnp.bfloat16)
    code_bf = jax.block_until_ready(code_bf)
    recon_bf = jax.block_until_ready(recon_bf)
    assert recon_bf.dtype == jnp.bfloat16
    code_bref, recon_bref = reference_forward_bf16(x_bf16, params)
    assert jnp.allclose(code_bf, code_bref, atol=2e-2, rtol=2e-2)
    assert jnp.allclose(recon_bf.astype(jnp.float32),
                        recon_bref.astype(jnp.float32), atol=3e-2, rtol=3e-2)

    print("KERNEL_OK")
</pallas_src>

<mosaic_0001>
module attributes {stable_mosaic.version = 11 : i64} {
  func.func @_ae2_kernel(%arg0: i32, %arg1: memref<64x128xf32, #tpu.memory_space<vmem>>, %arg2: memref<128x20xf32, #tpu.memory_space<vmem>>, %arg3: memref<1x20xf32, #tpu.memory_space<vmem>>, %arg4: memref<20x2xf32, #tpu.memory_space<vmem>>, %arg5: memref<1x2xf32, #tpu.memory_space<vmem>>, %arg6: memref<2x20xf32, #tpu.memory_space<vmem>>, %arg7: memref<1x20xf32, #tpu.memory_space<vmem>>, %arg8: memref<20x128xf32, #tpu.memory_space<vmem>>, %arg9: memref<1x128xf32, #tpu.memory_space<vmem>>, %arg10: memref<64x2xf32, #tpu.memory_space<vmem>>, %arg11: memref<64x128xf32, #tpu.memory_space<vmem>>) attributes {dimension_semantics = [#tpu.dimension_semantics<parallel>], iteration_bounds = array<i64: 4>, scalar_prefetch = 0 : i64, scratch_operands = 0 : i64, tpu.core_type = #tpu.core_type<tc>, window_params = [{transform_indices = @transform_0, window_bounds = array<i64: 64, 128>}, {pipeline_mode = #tpu.pipeline_mode<synchronous>, transform_indices = @transform_1, window_bounds = array<i64: 128, 20>}, {pipeline_mode = #tpu.pipeline_mode<synchronous>, transform_indices = @transform_2, window_bounds = array<i64: 1, 20>}, {pipeline_mode = #tpu.pipeline_mode<synchronous>, transform_indices = @transform_3, window_bounds = array<i64: 20, 2>}, {pipeline_mode = #tpu.pipeline_mode<synchronous>, transform_indices = @transform_4, window_bounds = array<i64: 1, 2>}, {pipeline_mode = #tpu.pipeline_mode<synchronous>, transform_indices = @transform_5, window_bounds = array<i64: 2, 20>}, {pipeline_mode = #tpu.pipeline_mode<synchronous>, transform_indices = @transform_6, window_bounds = array<i64: 1, 20>}, {pipeline_mode = #tpu.pipeline_mode<synchronous>, transform_indices = @transform_7, window_bounds = array<i64: 20, 128>}, {pipeline_mode = #tpu.pipeline_mode<synchronous>, transform_indices = @transform_8, window_bounds = array<i64: 1, 128>}, {transform_indices = @transform_9, window_bounds = array<i64: 64, 2>}, {transform_indices = @transform_10, window_bounds = array<i64: 64, 128>}]} {
    %c0 = arith.constant 0 : index
    %c0_0 = arith.constant 0 : index
    %0 = vector.load %arg1[%c0, %c0_0] : memref<64x128xf32, #tpu.memory_space<vmem>>, vector<64x128xf32>
    %c0_1 = arith.constant 0 : index
    %c0_2 = arith.constant 0 : index
    %1 = vector.load %arg2[%c0_1, %c0_2] : memref<128x20xf32, #tpu.memory_space<vmem>>, vector<128x20xf32>
    %cst = arith.constant dense<0.000000e+00> : vector<64x20xf32>
    %2 = tpu.matmul %0, %1, %cst {dimension_numbers = #tpu.dot_dimension_numbers<[1], [0], [0], [1], [0, 0, 1, 1], [], []>} : vector<64x128xf32>, vector<128x20xf32>, vector<64x20xf32> -> vector<64x20xf32>
    %c0_3 = arith.constant 0 : index
    %c0_4 = arith.constant 0 : index
    %3 = vector.load %arg3[%c0_3, %c0_4] : memref<1x20xf32, #tpu.memory_space<vmem>>, vector<1x20xf32>
    %4 = vector.broadcast %3 : vector<1x20xf32> to vector<64x20xf32>
    %5 = arith.addf %2, %4 : vector<64x20xf32>
    %cst_5 = arith.constant 0.000000e+00 : f32
    %6 = vector.broadcast %cst_5 : f32 to vector<64x20xf32>
    %7 = arith.maximumf %5, %6 : vector<64x20xf32>
    %c0_6 = arith.constant 0 : index
    %c0_7 = arith.constant 0 : index
    %8 = vector.load %arg4[%c0_6, %c0_7] : memref<20x2xf32, #tpu.memory_space<vmem>>, vector<20x2xf32>
    %cst_8 = arith.constant dense<0.000000e+00> : vector<64x2xf32>
    %9 = tpu.matmul %7, %8, %cst_8 {dimension_numbers = #tpu.dot_dimension_numbers<[1], [0], [0], [1], [0, 0, 1, 1], [], []>} : vector<64x20xf32>, vector<20x2xf32>, vector<64x2xf32> -> vector<64x2xf32>
    %c0_9 = arith.constant 0 : index
    %c0_10 = arith.constant 0 : index
    %10 = vector.load %arg5[%c0_9, %c0_10] : memref<1x2xf32, #tpu.memory_space<vmem>>, vector<1x2xf32>
    %11 = vector.broadcast %10 : vector<1x2xf32> to vector<64x2xf32>
    %12 = arith.addf %9, %11 : vector<64x2xf32>
    %c0_11 = arith.constant 0 : index
    %c0_12 = arith.constant 0 : index
    %13 = vector.load %arg10[%c0_11, %c0_12] : memref<64x2xf32, #tpu.memory_space<vmem>>, vector<64x2xf32>
    tpu.vector_store %arg10[%c0_11, %c0_12], %12 {strides = array<i32>} : memref<64x2xf32, #tpu.memory_space<vmem>>, vector<64x2xf32>,
    %c0_13 = arith.constant 0 : index
    %c0_14 = arith.constant 0 : index
    %14 = vector.load %arg6[%c0_13, %c0_14] : memref<2x20xf32, #tpu.memory_space<vmem>>, vector<2x20xf32>
    %15 = vector.extract_strided_slice %12 {offsets = [0, 0], sizes = [64, 1], strides = [1, 1]} : vector<64x2xf32> to vector<64x1xf32>
    %16 = vector.extract_strided_slice %14 {offsets = [0, 0], sizes = [1, 20], strides = [1, 1]} : vector<2x20xf32> to vector<1x20xf32>
    %17 = vector.broadcast %15 : vector<64x1xf32> to vector<64x20xf32>
    %18 = vector.broadcast %16 : vector<1x20xf32> to vector<64x20xf32>
    %19 = arith.mulf %17, %18 : vector<64x20xf32>
    %20 = vector.extract_strided_slice %12 {offsets = [0, 1], sizes = [64, 1], strides = [1, 1]} : vector<64x2xf32> to vector<64x1xf32>
    %21 = vector.extract_strided_slice %14 {offsets = [1, 0], sizes = [1, 20], strides = [1, 1]} : vector<2x20xf32> to vector<1x20xf32>
    %22 = vector.broadcast %20 : vector<64x1xf32> to vector<64x20xf32>
    %23 = vector.broadcast %21 : vector<1x20xf32> to vector<64x20xf32>
    %24 = arith.mulf %22, %23 : vector<64x20xf32>
    %25 = arith.addf %19, %24 : vector<64x20xf32>
    %c0_15 = arith.constant 0 : index
    %c0_16 = arith.constant 0 : index
    %26 = vector.load %arg7[%c0_15, %c0_16] : memref<1x20xf32, #tpu.memory_space<vmem>>, vector<1x20xf32>
    %27 = vector.broadcast %26 : vector<1x20xf32> to vector<64x20xf32>
    %28 = arith.addf %25, %27 : vector<64x20xf32>
    %cst_17 = arith.constant 0.000000e+00 : f32
    %29 = vector.broadcast %cst_17 : f32 to vector<64x20xf32>
    %30 = arith.maximumf %28, %29 : vector<64x20xf32>
    %c0_18 = arith.constant 0 : index
    %c0_19 = arith.constant 0 : index
    %31 = vector.load %arg8[%c0_18, %c0_19] : memref<20x128xf32, #tpu.memory_space<vmem>>, vector<20x128xf32>
    %cst_20 = arith.constant dense<0.000000e+00> : vector<64x128xf32>
    %32 = tpu.matmul %30, %31, %cst_20 {dimension_numbers = #tpu.dot_dimension_numbers<[1], [0], [0], [1], [0, 0, 1, 1], [], []>} : vector<64x20xf32>, vector<20x128xf32>, vector<64x128xf32> -> vector<64x128xf32>
    %c0_21 = arith.constant 0 : index
    %c0_22 = arith.constant 0 : index
    %33 = vector.load %arg9[%c0_21, %c0_22] : memref<1x128xf32, #tpu.memory_space<vmem>>, vector<1x128xf32>
    %34 = vector.broadcast %33 : vector<1x128xf32> to vector<64x128xf32>
    %35 = arith.addf %32, %34 : vector<64x128xf32>
    %cst_23 = arith.constant 0.000000e+00 : f32
    %36 = vector.broadcast %cst_23 : f32 to vector<64x128xf32>
    %37 = arith.maximumf %35, %36 : vector<64x128xf32>
    %c0_24 = arith.constant 0 : index
    %c0_25 = arith.constant 0 : index
    %38 = vector.load %arg11[%c0_24, %c0_25] : memref<64x128xf32, #tpu.memory_space<vmem>>, vector<64x128xf32>
    tpu.vector_store %arg11[%c0_24, %c0_25], %37 {strides = array<i32>} : memref<64x128xf32, #tpu.memory_space<vmem>>, vector<64x128xf32>,
    return
  }
  func.func @transform_0(%arg0: i32) -> (i32, i32) {
    %c0_i32 = arith.constant 0 : i32
    %c0_i32_0 = arith.constant 0 : i32
    return %arg0, %c0_i32 : i32, i32
  }
  func.func @transform_1(%arg0: i32) -> (i32, i32) {
    %c0_i32 = arith.constant 0 : i32
    %c0_i32_0 = arith.constant 0 : i32
    %c0_i32_1 = arith.constant 0 : i32
    return %c0_i32, %c0_i32_0 : i32, i32
  }
  func.func @transform_2(%arg0: i32) -> (i32, i32) {
    %c0_i32 = arith.constant 0 : i32
    %c0_i32_0 = arith.constant 0 : i32
    %c0_i32_1 = arith.constant 0 : i32
    return %c0_i32, %c0_i32_0 : i32, i32
  }
  func.func @transform_3(%arg0: i32) -> (i32, i32) {
    %c0_i32 = arith.constant 0 : i32
    %c0_i32_0 = arith.constant 0 : i32
    %c0_i32_1 = arith.constant 0 : i32
    return %c0_i32, %c0_i32_0 : i32, i32
  }
  func.func @transform_4(%arg0: i32) -> (i32, i32) {
    %c0_i32 = arith.constant 0 : i32
    %c0_i32_0 = arith.constant 0 : i32
    %c0_i32_1 = arith.constant 0 : i32
    return %c0_i32, %c0_i32_0 : i32, i32
  }
  func.func @transform_5(%arg0: i32) -> (i32, i32) {
    %c0_i32 = arith.constant 0 : i32
    %c0_i32_0 = arith.constant 0 : i32
    %c0_i32_1 = arith.constant 0 : i32
    return %c0_i32, %c0_i32_0 : i32, i32
  }
  func.func @transform_6(%arg0: i32) -> (i32, i32) {
    %c0_i32 = arith.constant 0 : i32
    %c0_i32_0 = arith.constant 0 : i32
    %c0_i32_1 = arith.constant 0 : i32
    return %c0_i32, %c0_i32_0 : i32, i32
  }
  func.func @transform_7(%arg0: i32) -> (i32, i32) {
    %c0_i32 = arith.constant 0 : i32
    %c0_i32_0 = arith.constant 0 : i32
    %c0_i32_1 = arith.constant 0 : i32
    return %c0_i32, %c0_i32_0 : i32, i32
  }
  func.func @transform_8(%arg0: i32) -> (i32, i32) {
    %c0_i32 = arith.constant 0 : i32
    %c0_i32_0 = arith.constant 0 : i32
    %c0_i32_1 = arith.constant 0 : i32
    return %c0_i32, %c0_i32_0 : i32, i32
  }
  func.func @transform_9(%arg0: i32) -> (i32, i32) {
    %c0_i32 = arith.constant 0 : i32
    %c0_i32_0 = arith.constant 0 : i32
    return %arg0, %c0_i32 : i32, i32
  }
  func.func @transform_10(%arg0: i32) -> (i32, i32) {
    %c0_i32 = arith.constant 0 : i32
    %c0_i32_0 = arith.constant 0 : i32
    return %arg0, %c0_i32 : i32, i32
  }
}

module attributes {stable_mosaic.version = 11 : i64} {
  func.func @_ae2_kernel(%arg0: i32, %arg1: memref<64x128xf32, #tpu.memory_space<vmem>>, %arg2: memref<128x20xf32, #tpu.memory_space<vmem>>, %arg3: memref<1x20xf32, #tpu.memory_space<vmem>>, %arg4: memref<20x2xf32, #tpu.memory_space<vmem>>, %arg5: memref<1x2xf32, #tpu.memory_space<vmem>>, %arg6: memref<2x20xf32, #tpu.memory_space<vmem>>, %arg7: memref<1x20xf32, #tpu.memory_space<vmem>>, %arg8: memref<20x128xf32, #tpu.memory_space<vmem>>, %arg9: memref<1x128xf32, #tpu.memory_space<vmem>>, %arg10: memref<64x2xf32, #tpu.memory_space<vmem>>, %arg11: memref<64x128xf32, #tpu.memory_space<vmem>>) attributes {dimension_semantics = [#tpu.dimension_semantics<parallel>], iteration_bounds = array<i64: 4>, scalar_prefetch = 0 : i64, scratch_operands = 0 : i64, tpu.core_type = #tpu.core_type<tc>, window_params = [{transform_indices = @transform_0, window_bounds = array<i64: 64, 128>}, {pipeline_mode = #tpu.pipeline_mode<synchronous>, transform_indices = @transform_1, window_bounds = array<i64: 128, 20>}, {pipeline_mode = #tpu.pipeline_mode<synchronous>, transform_indices = @transform_2, window_bounds = array<i64: 1, 20>}, {pipeline_mode = #tpu.pipeline_mode<synchronous>, transform_indices = @transform_3, window_bounds = array<i64: 20, 2>}, {pipeline_mode = #tpu.pipeline_mode<synchronous>, transform_indices = @transform_4, window_bounds = array<i64: 1, 2>}, {pipeline_mode = #tpu.pipeline_mode<synchronous>, transform_indices = @transform_5, window_bounds = array<i64: 2, 20>}, {pipeline_mode = #tpu.pipeline_mode<synchronous>, transform_indices = @transform_6, window_bounds = array<i64: 1, 20>}, {pipeline_mode = #tpu.pipeline_mode<synchronous>, transform_indices = @transform_7, window_bounds = array<i64: 20, 128>}, {pipeline_mode = #tpu.pipeline_mode<synchronous>, transform_indices = @transform_8, window_bounds = array<i64: 1, 128>}, {transform_indices = @transform_9, window_bounds = array<i64: 64, 2>}, {transform_indices = @transform_10, window_bounds = array<i64: 64, 128>}]} {
    %c0 = arith.constant 0 : index
    %c0_0 = arith.constant 0 : index
    %0 = vector.load %arg1[%c0, %c0_0] : memref<64x128xf32, #tpu.memory_space<vmem>>, vector<64x128xf32>
    %c0_1 = arith.constant 0 : index
    %c0_2 = arith.constant 0 : index
    %1 = vector.load %arg2[%c0_1, %c0_2] : memref<128x20xf32, #tpu.memory_space<vmem>>, vector<128x20xf32>
    %cst = arith.constant dense<0.000000e+00> : vector<64x20xf32>
    %2 = tpu.matmul %0, %1, %cst {dimension_numbers = #tpu.dot_dimension_numbers<[1], [0], [0], [1], [0, 0, 1, 1], [], []>} : vector<64x128xf32>, vector<128x20xf32>, vector<64x20xf32> -> vector<64x20xf32>
    %c0_3 = arith.constant 0 : index
    %c0_4 = arith.constant 0 : index
    %3 = vector.load %arg3[%c0_3, %c0_4] : memref<1x20xf32, #tpu.memory_space<vmem>>, vector<1x20xf32>
    %4 = vector.broadcast %3 : vector<1x20xf32> to vector<64x20xf32>
    %5 = arith.addf %2, %4 : vector<64x20xf32>
    %cst_5 = arith.constant 0.000000e+00 : f32
    %6 = vector.broadcast %cst_5 : f32 to vector<64x20xf32>
    %7 = arith.maximumf %5, %6 : vector<64x20xf32>
    %c0_6 = arith.constant 0 : index
    %c0_7 = arith.constant 0 : index
    %8 = vector.load %arg4[%c0_6, %c0_7] : memref<20x2xf32, #tpu.memory_space<vmem>>, vector<20x2xf32>
    %cst_8 = arith.constant dense<0.000000e+00> : vector<64x2xf32>
    %9 = tpu.matmul %7, %8, %cst_8 {dimension_numbers = #tpu.dot_dimension_numbers<[1], [0], [0], [1], [0, 0, 1, 1], [], []>} : vector<64x20xf32>, vector<20x2xf32>, vector<64x2xf32> -> vector<64x2xf32>
    %c0_9 = arith.constant 0 : index
    %c0_10 = arith.constant 0 : index
    %10 = vector.load %arg5[%c0_9, %c0_10] : memref<1x2xf32, #tpu.memory_space<vmem>>, vector<1x2xf32>
    %11 = vector.broadcast %10 : vector<1x2xf32> to vector<64x2xf32>
    %12 = arith.addf %9, %11 : vector<64x2xf32>
    %c0_11 = arith.constant 0 : index
    %c0_12 = arith.constant 0 : index
    %13 = vector.load %arg10[%c0_11, %c0_12] : memref<64x2xf32, #tpu.memory_space<vmem>>, vector<64x2xf32>
    tpu.vector_store %arg10[%c0_11, %c0_12], %12 {strides = array<i32>} : memref<64x2xf32, #tpu.memory_space<vmem>>, vector<64x2xf32>,
    %c0_13 = arith.constant 0 : index
    %c0_14 = arith.constant 0 : index
    %14 = vector.load %arg6[%c0_13, %c0_14] : memref<2x20xf32, #tpu.memory_space<vmem>>, vector<2x20xf32>
    %15 = vector.extract_strided_slice %12 {offsets = [0, 0], sizes = [64, 1], strides = [1, 1]} : vector<64x2xf32> to vector<64x1xf32>
    %16 = vector.extract_strided_slice %14 {offsets = [0, 0], sizes = [1, 20], strides = [1, 1]} : vector<2x20xf32> to vector<1x20xf32>
    %17 = vector.broadcast %15 : vector<64x1xf32> to vector<64x20xf32>
    %18 = vector.broadcast %16 : vector<1x20xf32> to vector<64x20xf32>
    %19 = arith.mulf %17, %18 : vector<64x20xf32>
    %20 = vector.extract_strided_slice %12 {offsets = [0, 1], sizes = [64, 1], strides = [1, 1]} : vector<64x2xf32> to vector<64x1xf32>
    %21 = vector.extract_strided_slice %14 {offsets = [1, 0], sizes = [1, 20], strides = [1, 1]} : vector<2x20xf32> to vector<1x20xf32>
    %22 = vector.broadcast %20 : vector<64x1xf32> to vector<64x20xf32>
    %23 = vector.broadcast %21 : vector<1x20xf32> to vector<64x20xf32>
    %24 = arith.mulf %22, %23 : vector<64x20xf32>
    %25 = arith.addf %19, %24 : vector<64x20xf32>
    %c0_15 = arith.constant 0 : index
    %c0_16 = arith.constant 0 : index
    %26 = vector.load %arg7[%c0_15, %c0_16] : memref<1x20xf32, #tpu.memory_space<vmem>>, vector<1x20xf32>
    %27 = vector.broadcast %26 : vector<1x20xf32> to vector<64x20xf32>
    %28 = arith.addf %25, %27 : vector<64x20xf32>
    %cst_17 = arith.constant 0.000000e+00 : f32
    %29 = vector.broadcast %cst_17 : f32 to vector<64x20xf32>
    %30 = arith.maximumf %28, %29 : vector<64x20xf32>
    %c0_18 = arith.constant 0 : index
    %c0_19 = arith.constant 0 : index
    %31 = vector.load %arg8[%c0_18, %c0_19] : memref<20x128xf32, #tpu.memory_space<vmem>>, vector<20x128xf32>
    %cst_20 = arith.constant dense<0.000000e+00> : vector<64x128xf32>
    %32 = tpu.matmul %30, %31, %cst_20 {dimension_numbers = #tpu.dot_dimension_numbers<[1], [0], [0], [1], [0, 0, 1, 1], [], []>} : vector<64x20xf32>, vector<20x128xf32>, vector<64x128xf32> -> vector<64x128xf32>
    %c0_21 = arith.constant 0 : index
    %c0_22 = arith.constant 0 : index
    %33 = vector.load %arg9[%c0_21, %c0_22] : memref<1x128xf32, #tpu.memory_space<vmem>>, vector<1x128xf32>
    %34 = vector.broadcast %33 : vector<1x128xf32> to vector<64x128xf32>
    %35 = arith.addf %32, %34 : vector<64x128xf32>
    %cst_23 = arith.constant 0.000000e+00 : f32
    %36 = vector.broadcast %cst_23 : f32 to vector<64x128xf32>
    %37 = arith.maximumf %35, %36 : vector<64x128xf32>
    %c0_24 = arith.constant 0 : index
    %c0_25 = arith.constant 0 : index
    %38 = vector.load %arg11[%c0_24, %c0_25] : memref<64x128xf32, #tpu.memory_space<vmem>>, vector<64x128xf32>
    tpu.vector_store %arg11[%c0_24, %c0_25], %37 {strides = array<i32>} : memref<64x128xf32, #tpu.memory_space<vmem>>, vector<64x128xf32>,
    return
  }
  func.func @transform_0(%arg0: i32) -> (i32, i32) {
    %c0_i32 = arith.constant 0 : i32
    %c0_i32_0 = arith.constant 0 : i32
    return %arg0, %c0_i32 : i32, i32
  }
  func.func @transform_1(%arg0: i32) -> (i32, i32) {
    %c0_i32 = arith.constant 0 : i32
    %c0_i32_0 = arith.constant 0 : i32
    %c0_i32_1 = arith.constant 0 : i32
    return %c0_i32, %c0_i32_0 : i32, i32
  }
  func.func @transform_2(%arg0: i32) -> (i32, i32) {
    %c0_i32 = arith.constant 0 : i32
    %c0_i32_0 = arith.constant 0 : i32
    %c0_i32_1 = arith.constant 0 : i32
    return %c0_i32, %c0_i32_0 : i32, i32
  }
  func.func @transform_3(%arg0: i32) -> (i32, i32) {
    %c0_i32 = arith.constant 0 : i32
    %c0_i32_0 = arith.constant 0 : i32
    %c0_i32_1 = arith.constant 0 : i32
    return %c0_i32, %c0_i32_0 : i32, i32
  }
  func.func @transform_4(%arg0: i32) -> (i32, i32) {
    %c0_i32 = arith.constant 0 : i32
    %c0_i32_0 = arith.constant 0 : i32
    %c0_i32_1 = arith.constant 0 : i32
    return %c0_i32, %c0_i32_0 : i32, i32
  }
  func.func @transform_5(%arg0: i32) -> (i32, i32) {
    %c0_i32 = arith.constant 0 : i32
    %c0_i32_0 = arith.constant 0 : i32
    %c0_i32_1 = arith.constant 0 : i32
    return %c0_i32, %c0_i32_0 : i32, i32
  }
  func.func @transform_6(%arg0: i32) -> (i32, i32) {
    %c0_i32 = arith.constant 0 : i32
    %c0_i32_0 = arith.constant 0 : i32
    %c0_i32_1 = arith.constant 0 : i32
    return %c0_i32, %c0_i32_0 : i32, i32
  }
  func.func @transform_7(%arg0: i32) -> (i32, i32) {
    %c0_i32 = arith.constant 0 : i32
    %c0_i32_0 = arith.constant 0 : i32
    %c0_i32_1 = arith.constant 0 : i32
    return %c0_i32, %c0_i32_0 : i32, i32
  }
  func.func @transform_8(%arg0: i32) -> (i32, i32) {
    %c0_i32 = arith.constant 0 : i32
    %c0_i32_0 = arith.constant 0 : i32
    %c0_i32_1 = arith.constant 0 : i32
    return %c0_i32, %c0_i32_0 : i32, i32
  }
  func.func @transform_9(%arg0: i32) -> (i32, i32) {
    %c0_i32 = arith.constant 0 : i32
    %c0_i32_0 = arith.constant 0 : i32
    return %arg0, %c0_i32 : i32, i32
  }
  func.func @transform_10(%arg0: i32) -> (i32, i32) {
    %c0_i32 = arith.constant 0 : i32
    %c0_i32_0 = arith.constant 0 : i32
    return %arg0, %c0_i32 : i32, i32
  }
}

</mosaic_0001>

<bundles_post_ra>
// kernel: tpu_custom_call.1
= control target key start
LH: loop header
LB: loop body
LE: loop exit
PB: predicated region body
PF: predicated region fallthrough
CT: control target
= control target key end

     0   :  { %16 = vsyncpa [#allocation3], 0  ;;  %s1819_s0 = inlined_call_operand.hbm [shape: f32[256,128], index: 0, kind: input, shape index: {}]   ;;  %s1820_s1 = inlined_call_operand.vmem [shape: f32[128,20], index: 1, kind: input, shape index: {}]   ;;  %s1821_s2 = inlined_call_operand.vmem [shape: f32[1,20], index: 2, kind: input, shape index: {}]   ;;  %s1822_s3 = inlined_call_operand.vmem [shape: f32[20,2], index: 3, kind: input, shape index: {}]   ;;  %s1823_s4 = inlined_call_operand.vmem [shape: f32[1,2], index: 4, kind: input, shape index: {}]   ;;  %s1824_s5 = inlined_call_operand.vmem [shape: f32[2,20], index: 5, kind: input, shape index: {}]   ;;  %s1825_s6 = inlined_call_operand.vmem [shape: f32[1,20], index: 6, kind: input, shape index: {}]   ;;  %s1826_s7 = inlined_call_operand.vmem [shape: f32[20,128], index: 7, kind: input, shape index: {}]   ;;  %s1827_s8 = inlined_call_operand.vmem [shape: f32[1,128], index: 8, kind: input, shape index: {}]   ;;  %s1828_s9 = inlined_call_operand.vmem [shape: f32[256,2], index: 9, kind: output, shape index: {0}]   ;;  %s1829_s10 = inlined_call_operand.hbm [shape: f32[256,128], index: 10, kind: output, shape index: {1}]  }
   0x1   :  { %18 = vsyncpa [#allocation3 + $0x1], 0 }
   0x2   :  { %19 = vsyncpa [#allocation4], 0 }
   0x3   :  { %21 = vsyncpa [#allocation4 + $0x1], 0  ;;  %s1522_s13 = smov 0   ;;  %s1524_s14 = smov 0  }
   0x4   :  { %s1526_s15 = smov 0   ;;  %s1528_s16 = smov 0  }
   0x5 LB: > { %s1543_s17 = sadd.s32 4294967295, %s1457_s16   ;;  %s1098_s18 = sadd.s32 4294967294, %s1457_s16   ;;  %s1457_s16 = sphi %s1528_s16, %s1845_s16   ;;  %s1453_s15 = sphi %s1526_s15, %s1844_s15   ;;  %s1449_s14 = sphi %s1524_s14, %s1843_s14   ;;  %s1445_s13 = sphi %s1522_s13, %s1842_s13  }
   0x6   : > { %s1547_s19 = sadd.s32 1, %s1457_s16   ;;  %s34_s20 = sadd.s32 1, %s1453_s15 }
   0x7   : > { %s31_s21 = ssub.s32 %s1457_s16, %s1547_s19  ;;  %p41_p0 = scmp.ne.s32.totalorder %s1453_s15, %s1449_s14 }
   0x8   : > { %p32_p1 = scmp.eq.s32.totalorder %s31_s21, 0  ;;  %p42_p2 = scmp.eq.s32.totalorder %s1457_s16, 0 }
   0x9   : > { %p47_p3 = scmp.ne.s32.totalorder %s1449_s14, %s1445_s13  ;;  %p48_p4 = scmp.eq.s32.totalorder %s1543_s17, 0 }
   0xa   : > { %s1559_s22 = scalar_select %p32_p1, %s1453_s15, %s34_s20  }
   0xb   : > { %p1561_p5 = por %p42_p2, %p41_p0  ;;  %p1565_p6 = por %p48_p4, %p47_p3 }
   0xc   : > { %1832 = sst [smem:[#allocation8_spill]] %s1559_s22  ;;  %p265_p7 = scmp.eq.s32.totalorder %s1543_s17, 3 }
   0xd   : > { %p271_p8 = scmp.eq.s32.totalorder %s1098_s18, 3  ;;  %p1316_p9 = scmp.lt.s32.totalorder %s1457_s16, 4 }
   0xe   : > { %p1571_p10 = por %p265_p7, %p41_p0  ;;  %s315_s27 = sand.u32 1, %s1453_s15  }
   0xf   : > { %p1575_p11 = por %p271_p8, %p47_p3  ;;  %s1136_s28 = sshll.u32 %s1457_s16, 10 }
  0x10   : > { %s1835_s25 = scalar_select %p1571_p10, 1, 0 }
  0x11   : > { %s1836_s26 = scalar_select %p1575_p11, 1, 0 }
  0x12   : > { %s1101_s29 = sshll.u32 %s315_s27, 6  ;;  %s1584_s12 = scalar_lea.hbm %s1819_s0, %s1136_s28 }
  0x13   : > { %s319_s18 = scalar_lea.vmem [#allocation2], %s1101_s29  ;;  %p1588_p12 = pnand %p1316_p9, %p1561_p5 }
  0x14   : > { %s326_s20 = sshll.u32 %s319_s18, 4  ;;  %s1594_s22 = scalar_lea.sflag [#allocation3], %s315_s27  ;;  %s1592_s20 = int_to_ptr.vmem [resolvable:$true] %s326_s20 }
  0x15   : > { %s1361_s30 = scalar_lea.hbm %s1584_s12, 1024  ;;  %p1363_p0 = pneg %p1588_p12 }
  0x16   : > { %p1362_p13 = scmp.ne.s32.totalorder %s1584_s12, %s1361_s30  ;;  %s1366_s29 = scalar_lea.hbm %s1819_s0, 4096 }
  0x17   : > { %p1367_p3 = scmp.lt.u32.totalorder %s1584_s12, %s1819_s0  ;;  %p1368_p4 = scmp.lt.u32.totalorder %s1366_s29, %s1361_s30 }
  0x18   : > { %p1364_p1 = pnand %p1363_p0, %p1362_p13  ;;  %p1370_p7 = scmp.lt.u32.totalorder %s1361_s30, %s1584_s12 }
  0x19   : > { %p1369_p5 = por %p1368_p4, %p1367_p3 }
  0x1a   : > { %p1365_p2 = pneg %p1364_p1 }
  0x1b   : > { %p1371_p8 = por %p1370_p7, %p1369_p5 }
  0x1d   : > { %p1372_p9 = pnand %p1371_p8, %p1365_p2 }
  0x1f   : > { %1375 = shalt.err (!%p1372_p9)
}
  0x20   : > { %s1376_s27 = scalar_lea.vmem %s1592_s20, 1024  ;;  %s1459_s28 = smov [#allocation2]  }
  0x21   : > { %p1377_p13 = scmp.ne.s32.totalorder %s1592_s20, %s1376_s27  ;;  %s1381_s23 = sshll.u32 %s1459_s28, 4  ;;  %s1382_s23 = int_to_ptr.vmem [resolvable:$false] %s1381_s23 }
  0x22   : > { %s1383_s11 = scalar_lea.vmem %s1382_s23, 2048  ;;  %p1384_p10 = scmp.lt.s32.totalorder %s1592_s20, %s1382_s23 }
  0x23   : > { %p1379_p1 = pnand %p1377_p13, %p1363_p0  ;;  %p1385_p3 = scmp.lt.s32.totalorder %s1383_s11, %s1376_s27 }
  0x25   : > { %p1380_p11 = pneg %p1379_p1  ;;  %p1386_p4 = por %p1385_p3, %p1384_p10 }
  0x27   : > { %p1387_p5 = pnand %p1386_p4, %p1380_p11 }
  0x29   : > { %1390 = shalt.err (!%p1387_p5)
}
  0x2a   : > { %s1460_s30 = smov 128   ;;  %s1461_s29 = smov 8  }
  0x2b   : > { %1311 = dma.hbm_to_vmem [thread:$0]  (!%p1588_p12), %s1584_s12, 1024, %s1592_s20, %s1594_s22, %s1460_s30, %s1460_s30, %s1461_s29  }
  0x2c   : > { %p1104_p0 = scmp.ge.s32.totalorder %s1457_s16, 1  ;;  %p334_p2 = scmp.lt.s32.totalorder %s1457_s16, 5 }
  0x2e   : > { %p335_p7 = pnand %p1104_p0, %p334_p2 }
  0x2f   : > { %s1625_s18 = sand.u32 (!%p335_p7), 1, %s1449_s14  }
  0x30   : > { %338 = sbr.rel (%p335_p7) target bundleno = 921 (0x399), region = 56  ;;  %s1831_s27 = sshll.u32 (!%p335_p7), %s1625_s18, 6 }
  0x31   : > { %s341_s28 = scalar_lea.sflag (!%p335_p7), [#allocation3], %s1625_s18  ;;  %s1631_s23 = scalar_lea.vmem (!%p335_p7), [#allocation2], %s1831_s27 }
  0x37   : > { %1436 = dma.done.wait (%p1565_p6), %s341_s28, 1024  }
  0x38   : > { %1438 = vsyncadd (%p1565_p6), %s341_s28, 4294966272  ;;  %v402_v0 = vld [vmem:[%s1820_s1] sm:$0xff]  ;;  %v403_v1 = vld [vmem:[%s1820_s1 + $0x8] sm:$0xff]  ;;  %vm573_vm0 = vcmask 1043456   ;;  %vm548_vm1 = vcmask 162816   ;;  %v1462_v61 = vmov 0  }
  0x39   : > { %v404_v2 = vld [vmem:[%s1820_s1 + $0x10] sm:$0xff]  ;;  %v1264_v3 = vpack.c.bf16 %v403_v1, %v402_v0  ;;  %v405_v4 = vld [vmem:[%s1820_s1 + $0x18] sm:$0xff]  ;;  %v406_v6 = vld [vmem:[%s1820_s1 + $0x20] sm:$0xff]  ;;  %1356 = vset.pattern.permute.xlu1 %v1462_v61  ;;  %1358 = vset.pattern.permute.xlu0 %v1462_v61  ;;  %s1107_s28 = sshll.u32 %s1543_s17, 3  ;;  %vm682_vm2 = vcmask 15360   ;;  %s1838_s29 = sshll.u32 %s1625_s18, 6 }
  0x3a   : > { %v1268_v5 = vpack.c.bf16 %v405_v4, %v404_v2  ;;  %v407_v7 = vld [vmem:[%s1820_s1 + $0x28] sm:$0xff]  ;;  %v394_v9 = vld [vmem:[%s1631_s23] sm:$0xff]  ;;  %v408_v10 = vld [vmem:[%s1820_s1 + $0x30] sm:$0xff]  ;;  %p388_p6 = scmp.lt.s32.totalorder %s1107_s28, 31  ;;  %s983_s21 = scalar_lea.sflag [#allocation4], %s1625_s18 }
  0x3b   : > { %1265 = vmatprep.subr.bf16.mxu0 %v1264_v3  ;;  %v1272_v8 = vpack.c.bf16 %v407_v7, %v406_v6  ;;  %v409_v11 = vld [vmem:[%s1820_s1 + $0x38] sm:$0xff]  ;;  %1216 = vmatprep.mubr.f32.mxu0 %v394_v9  ;;  %v410_v13 = vld [vmem:[%s1820_s1 + $0x40] sm:$0xff]  ;;  %v411_v14 = vld [vmem:[%s1820_s1 + $0x48] sm:$0xff]  ;;  %v1463_v7 = vmov 1   ;;  %p1839_p11 = scmp.ne.s32.totalorder %s1835_s25, 0 }
  0x3c   : > { %1267 = vmatpush3.bf16.msra.mxu0 %v1264_v3  ;;  %v1276_v12 = vpack.c.bf16 %v409_v11, %v408_v10  ;;  %v1280_v15 = vpack.c.bf16 %v411_v14, %v410_v13  ;;  %v412_v16 = vld [vmem:[%s1820_s1 + $0x50] sm:$0xff]  ;;  %v413_v17 = vld [vmem:[%s1820_s1 + $0x58] sm:$0xff]  ;;  %v414_v19 = vld [vmem:[%s1820_s1 + $0x60] sm:$0xff]  ;;  %s1847_s28 = smov (!%p388_p6, %s1107_s28), 31 }
  0x3d   : > { %1269 = vmatprep.subr.bf16.mxu0 %v1268_v5  ;;  %v1284_v18 = vpack.c.bf16 %v413_v17, %v412_v16  ;;  %v415_v20 = vld [vmem:[%s1820_s1 + $0x68] sm:$0xff]  ;;  %v416_v22 = vld [vmem:[%s1820_s1 + $0x70] sm:$0xff]  ;;  %v417_v23 = vld [vmem:[%s1820_s1 + $0x78] sm:$0xff]  ;;  %s1108_s22 = sshll.u32 %s1847_s28, 3  ;;  %s1137_s28 = sshll.u32 %s1543_s17, 10 }
  0x3e   : > { %v1288_v21 = vpack.c.bf16 %v415_v20, %v414_v19  ;;  %v1292_v24 = vpack.c.bf16 %v417_v23, %v416_v22  ;;  %v395_v25 = vld [vmem:[%s1631_s23 + $0x8] sm:$0xff]  ;;  %v396_v26 = vld [vmem:[%s1631_s23 + $0x10] sm:$0xff]  ;;  %v397_v27 = vld [vmem:[%s1631_s23 + $0x18] sm:$0xff]  ;;  %s1722_s11 = scalar_lea.vmem %s1828_s9, %s1108_s22  ;;  %v732_v20 = vlaneseq  ;;  %s1776_s20 = scalar_lea.hbm %s1829_s10, %s1137_s28 }
  0x3f   : > { %v398_v28 = vld [vmem:[%s1631_s23 + $0x20] sm:$0xff]  ;;  %v399_v29 = vld [vmem:[%s1631_s23 + $0x28] sm:$0xff]  ;;  %v400_v30 = vld [vmem:[%s1631_s23 + $0x30] sm:$0xff]  ;;  %s1464_s17 = smov [#allocation5]  }
  0x40   : > { %1271 = vmatpush3.bf16.msra.mxu0 %v1268_v5  ;;  %v401_v31 = vld [vmem:[%s1631_s23 + $0x38] sm:$0xff]  ;;  %v538_v32 = vld [vmem:[%s1822_s3] sm:$0xff]  ;;  %v539_v33 = vld [vmem:[%s1822_s3 + $0x8] sm:$0xff]  ;;  %s385_s23 = scalar_lea.vmem [#allocation5], %s1838_s29 }
  0x41   : > { %1273 = vmatprep.subr.bf16.mxu0 %v1272_v8  ;;  %v1296_v34 = vpack.c.bf16 %v539_v33, %v538_v32  ;;  %v540_v35 = vld [vmem:[%s1822_s3 + $0x10] sm:$0xf]  ;;  %v1109_v36 = vld [vmem:[%s1821_s2] ss:$0 sm:$0xff]  ;;  %s1000_s24 = sshll.u32 %s385_s23, 4  ;;  %s1771_s24 = int_to_ptr.vmem [resolvable:$true] %s1000_s24 }
  0x42   : > { %v1110_v62 = vld [vmem:[%s1823_s4] ss:$0 sm:$0xff]  ;;  %v821_v19 = vld [vmem:[%s1826_s7 + $0x10] sm:$0xf]  ;;  %s1391_s27 = scalar_lea.vmem %s1771_s24, 1024 }
  0x43   : > { %1297 = vmatprep.subr.bf16.mxu1 %v1296_v34  ;;  %v819_v11 = vld [vmem:[%s1826_s7] sm:$0xff]  ;;  %p1392_p10 = scmp.ne.s32.totalorder %s1771_s24, %s1391_s27 }
  0x44   : > { %1275 = vmatpush3.bf16.msra.mxu0 %v1272_v8  ;;  %1299 = vmatpush3.bf16.msra.mxu1 %v1296_v34  ;;  %v1120_v34 = vld [vmem:[%s1825_s6] ss:$0 sm:$0xff] }
  0x45   : > { %1277 = vmatprep.subr.bf16.mxu0 %v1276_v12  ;;  %1232 = vmatprep.subr.msk.mxu1 %vm573_vm0, %v540_v35  ;;  %p1393_p12 = pnand %p1392_p10, %p1839_p11 }
  0x47   : > { %p1394_p8 = pneg %p1393_p12 }
  0x48   : > { %1279 = vmatpush3.bf16.msra.mxu0 %v1276_v12  ;;  %1233 = vmatpush3.msk.msra.mxu1 %vm573_vm0, %v540_v35  ;;  %v820_v12 = vld [vmem:[%s1826_s7 + $0x8] sm:$0xff] }
  0x49   : > { %1281 = vmatprep.subr.bf16.mxu0 %v1280_v15  ;;  %v1300_v14 = vpack.c.bf16 %v820_v12, %v819_v11 }
  0x4b   : > { %1301 = vmatprep.subr.bf16.mxu1 %v1300_v14 }
  0x4c   : > { %1283 = vmatpush3.bf16.msra.mxu0 %v1280_v15 }
  0x4d   : > { %1285 = vmatprep.subr.bf16.mxu0 %v1284_v18 }
  0x50   : > { %1287 = vmatpush3.bf16.msra.mxu0 %v1284_v18 }
  0x51   : > { %1289 = vmatprep.subr.bf16.mxu0 %v1288_v21 }
  0x54   : > { %1291 = vmatpush3.bf16.msra.mxu0 %v1288_v21  ;;  %v733_v21 = vshrl.u32 %v732_v20, 7  ;;  %v1121_v20 = vld [vmem:[%s1827_s8] ss:$0 sm:$0xff] }
  0x55   : > { %1293 = vmatprep.subr.bf16.mxu0 %v1292_v24 }
  0x56   : > { %v734_v22 = vsub.s32 0, %v733_v21  ;;  %v778_v23 = vsub.s32 1, %v733_v21 }
  0x58   : > { %1295 = vmatpush3.bf16.msra.mxu0 %v1292_v24  ;;  %v691_v24 = vld [vmem:[%s1824_s5] sm:$0x3] }
  0x5b   : > { %1217 = vmatmul.mubr.f32.vlgmr.msra.gmra.mrb[0].mxu0 %v395_v25 }
  0x5c   : > { %1219 = vmatprep.mubr.f32.mxu0 %v396_v26 }
  0x5f   : > { %1220 = vmatmul.mubr.f32.gmra.mrb[2].mxu0 %v397_v27  ;;  %v735_v27 = vrot.slane %v691_v24, %v734_v22 }
  0x60   : > { %1222 = vmatprep.mubr.f32.mxu0 %v398_v28  ;;  %v779_v28 = vrot.slane %v691_v24, %v778_v23 }
  0x63   : > { %1223 = vmatmul.mubr.f32.gmra.mrb[4].mxu0 %v399_v29 }
  0x64   : > { %1225 = vmatprep.mubr.f32.mxu0 %v400_v30 }
  0x67   : > { %1226 = vmatmul.mubr.f32.gmra.mrb[6].mxu0 %v401_v31 }
 0x12e   : > { %v1218_v37 = vpop.f32.mrb[0].mxu0 }
 0x12f   : > { %v497_v38 = vadd.f32 %v1218_v37, %v1109_v36  ;;  %v491_v39 = vpop.f32.mrb[1].mxu0 }
 0x130   : > { %v492_v40 = vadd.f32 %v1109_v36, %v491_v39 }
 0x131   : > { %v531_v43 = vmax.f32 %v497_v38, 0.0 }
 0x132   : > { %v530_v41 = vmax.f32 %v492_v40, 0.0  ;;  %v1221_v42 = vpop.f32.mrb[2].mxu0 }
 0x133   : > { %v507_v44 = vadd.f32 %v1221_v42, %v1109_v36  ;;  %v501_v45 = vpop.f32.mrb[3].mxu0 }
 0x134   : > { %1234 = vmatprep.mubr.msk.f32.mxu1 %vm548_vm1, %v530_v41  ;;  %v502_v46 = vadd.f32 %v1109_v36, %v501_v45 }
 0x135   : > { %v533_v47 = vmax.f32 %v507_v44, 0.0  ;;  %1235 = vmatmul.mubr.msk.f32.vlgmr.msra.gmra.mrb[0].mxu1 %vm548_vm1, %v531_v43 }
 0x136   : > { %v532_v48 = vmax.f32 %v502_v46, 0.0  ;;  %v1224_v49 = vpop.f32.mrb[4].mxu0  ;;  %1303 = vmatpush3.bf16.msra.mxu1 %v1300_v14 }
 0x137   : > { %v517_v50 = vadd.f32 %v1224_v49, %v1109_v36  ;;  %v511_v51 = vpop.f32.mrb[5].mxu0  ;;  %1250 = vmatprep.subr.msk.mxu1 %vm573_vm0, %v821_v19 }
 0x138   : > { %1237 = vmatprep.mubr.msk.f32.mxu1 %vm548_vm1, %v532_v48  ;;  %v512_v52 = vadd.f32 %v1109_v36, %v511_v51 }
 0x139   : > { %1238 = vmatmul.mubr.msk.f32.gmra.mrb[2].mxu1 %vm548_vm1, %v533_v47  ;;  %v535_v53 = vmax.f32 %v517_v50, 0.0 }
 0x13a   : > { %v534_v54 = vmax.f32 %v512_v52, 0.0  ;;  %v1227_v55 = vpop.f32.mrb[6].mxu0  ;;  %1251 = vmatpush3.msk.msra.mxu1 %vm573_vm0, %v821_v19 }
 0x13b   : > { %v527_v56 = vadd.f32 %v1227_v55, %v1109_v36  ;;  %v521_v57 = vpop.f32.mrb[7].mxu0 }
 0x13c   : > { %1240 = vmatprep.mubr.msk.f32.mxu1 %vm548_vm1, %v534_v54  ;;  %v522_v58 = vadd.f32 %v1109_v36, %v521_v57 }
 0x13d   : > { %v537_v59 = vmax.f32 %v527_v56, 0.0  ;;  %1241 = vmatmul.mubr.msk.f32.gmra.mrb[4].mxu1 %vm548_vm1, %v535_v53 }
 0x13e   : > { %v536_v60 = vmax.f32 %v522_v58, 0.0 }
 0x140   : > { %1243 = vmatprep.mubr.msk.f32.mxu1 %vm548_vm1, %v536_v60 }
 0x141   : > { %1244 = vmatmul.mubr.msk.f32.gmra.mrb[6].mxu1 %vm548_vm1, %v537_v59 }
 0x208   : > { %v1236_v63 = vpop.f32.mrb[0].mxu1 }
 0x209   : > { %v649_v0 = vadd.f32 %v1236_v63, %v1110_v62  ;;  %v643_v1 = vpop.f32.mrb[1].mxu1 }
 0x20a   : > { %v644_v2 = vadd.f32 %v1110_v62, %v643_v1 }
 0x20b   : > { %684 = vst.msk [vmem:[%s1722_s11 + $0x8] sm:$0xff] %vm682_vm2, %v649_v0  ;;  %699 = vperm.xlu1 %1356, %v649_v0  }
 0x20c   : > { %683 = vst.msk [vmem:[%s1722_s11] sm:$0xff] %vm682_vm2, %v644_v2  ;;  %694 = vperm.xlu0 %1358, %v644_v2   ;;  %v1239_v3 = vpop.f32.mrb[2].mxu1 }
 0x20d   : > { %v659_v4 = vadd.f32 %v1239_v3, %v1110_v62  ;;  %v653_v5 = vpop.f32.mrb[3].mxu1 }
 0x20e   : > { %v654_v6 = vadd.f32 %v1110_v62, %v653_v5 }
 0x20f   : > { %1357 = vset.pattern.permute.xlu1 %v1463_v7  ;;  %686 = vst.msk [vmem:[%s1722_s11 + $0x18] sm:$0xff] %vm682_vm2, %v659_v4 }
 0x210   : > { %749 = vperm.xlu1 %1357, %v649_v0   ;;  %685 = vst.msk [vmem:[%s1722_s11 + $0x10] sm:$0xff] %vm682_vm2, %v654_v6  ;;  %1359 = vset.pattern.permute.xlu0 %v1463_v7  ;;  %v1242_v8 = vpop.f32.mrb[4].mxu1 }
 0x211   : > { %745 = vperm.xlu0 %1359, %v644_v2   ;;  %v669_v9 = vadd.f32 %v1242_v8, %v1110_v62  ;;  %v663_v10 = vpop.f32.mrb[5].mxu1 }
 0x212   : > { %v664_v13 = vadd.f32 %v1110_v62, %v663_v10 }
 0x213   : > { %688 = vst.msk [vmem:[%s1722_s11 + $0x28] sm:$0xff] %vm682_vm2, %v669_v9 }
 0x214   : > { %1360 = vset.pattern.permute.xlu1 %v1462_v61  ;;  %687 = vst.msk [vmem:[%s1722_s11 + $0x20] sm:$0xff] %vm682_vm2, %v664_v13  ;;  %v1245_v15 = vpop.f32.mrb[6].mxu1 }
 0x215   : > { %709 = vperm.xlu1 %1360, %v659_v4   ;;  %757 = vperm.xlu0 %1359, %v659_v4   ;;  %v679_v16 = vadd.f32 %v1245_v15, %v1110_v62  ;;  %v673_v17 = vpop.f32.mrb[7].mxu1 }
 0x216   : > { %v674_v18 = vadd.f32 %v1110_v62, %v673_v17 }
 0x217   : > { %690 = vst.msk [vmem:[%s1722_s11 + $0x38] sm:$0xff] %vm682_vm2, %v679_v16 }
 0x218   : > { %689 = vst.msk [vmem:[%s1722_s11 + $0x30] sm:$0xff] %vm682_vm2, %v674_v18  ;;  %s1395_s11 = sshll.u32 %s1464_s17, 4  ;;  %s1396_s11 = int_to_ptr.vmem [resolvable:$false] %s1395_s11 }
 0x219   : > { %704 = vperm.xlu1 %1360, %v654_v6   ;;  %753 = vperm.xlu0 %1359, %v654_v6   ;;  %s1397_s30 = scalar_lea.vmem %s1396_s11, 2048  ;;  %p1398_p9 = scmp.lt.s32.totalorder %s1771_s24, %s1396_s11 }
 0x21a   : > { %p1399_p13 = scmp.lt.s32.totalorder %s1397_s30, %s1391_s27 }
 0x21c   : > { %p1400_p1 = por %p1399_p13, %p1398_p9 }
 0x21d   : > { %719 = vperm.xlu1 %1360, %v669_v9   ;;  %765 = vperm.xlu0 %1359, %v669_v9  }
 0x21e   : > { %p1401_p3 = pnand %p1400_p1, %p1394_p8 }
 0x221   : > { %714 = vperm.xlu1 %1360, %v664_v13   ;;  %761 = vperm.xlu0 %1359, %v664_v13  }
 0x225   : > { %724 = vperm.xlu1 %1360, %v674_v18   ;;  %769 = vperm.xlu0 %1359, %v674_v18  }
 0x229   : > { %729 = vperm.xlu1 %1360, %v679_v16   ;;  %773 = vperm.xlu0 %1359, %v679_v16  }
 0x28a   : > { %v700_v25 = vpop.permute.xlu1 %699 }
 0x28b   : > { %v695_v26 = vpop.permute.xlu0 %694  ;;  %v737_v30 = vmul.f32 %v735_v27, %v700_v25 }
 0x28c   : > { %v736_v33 = vmul.f32 %v735_v27, %v695_v26 }
 0x28f   : > { %v750_v29 = vpop.permute.xlu1 %749 }
 0x290   : > { %v781_v31 = vmul.f32 %v779_v28, %v750_v29  ;;  %v746_v32 = vpop.permute.xlu0 %745 }
 0x291   : > { %v780_v35 = vmul.f32 %v779_v28, %v746_v32 }
 0x292   : > { %v789_v36 = vadd.f32 %v781_v31, %v737_v30 }
 0x293   : > { %v788_v37 = vadd.f32 %v780_v35, %v736_v33 }
 0x294   : > { %v804_v38 = vadd.f32 %v1120_v34, %v789_v36  ;;  %v710_v39 = vpop.permute.xlu1 %709  ;;  %v758_v40 = vpop.permute.xlu0 %757 }
 0x295   : > { %v803_v41 = vadd.f32 %v1120_v34, %v788_v37  ;;  %v739_v42 = vmul.f32 %v735_v27, %v710_v39  ;;  %v783_v43 = vmul.f32 %v779_v28, %v758_v40 }
 0x296   : > { %v812_v45 = vmax.f32 %v804_v38, 0.0 }
 0x297   : > { %v811_v44 = vmax.f32 %v803_v41, 0.0  ;;  %v791_v46 = vadd.f32 %v783_v43, %v739_v42 }
 0x298   : > { %v705_v47 = vpop.permute.xlu1 %704  ;;  %v754_v48 = vpop.permute.xlu0 %753 }
 0x299   : > { %v738_v49 = vmul.f32 %v735_v27, %v705_v47  ;;  %v782_v50 = vmul.f32 %v779_v28, %v754_v48  ;;  %1252 = vmatprep.mubr.msk.f32.mxu1 %vm548_vm1, %v811_v44  ;;  %v806_v52 = vadd.f32 %v1120_v34, %v791_v46 }
 0x29a   : > { %1253 = vmatmul.mubr.msk.f32.vlgmr.msra.gmra.mrb[8].mxu1 %vm548_vm1, %v812_v45 }
 0x29b   : > { %v790_v51 = vadd.f32 %v782_v50, %v738_v49  ;;  %v814_v59 = vmax.f32 %v806_v52, 0.0 }
 0x29c   : > { %v720_v53 = vpop.permute.xlu1 %719  ;;  %v766_v54 = vpop.permute.xlu0 %765 }
 0x29d   : > { %v805_v55 = vadd.f32 %v1120_v34, %v790_v51  ;;  %v741_v56 = vmul.f32 %v735_v27, %v720_v53  ;;  %v785_v57 = vmul.f32 %v779_v28, %v766_v54 }
 0x29f   : > { %v813_v58 = vmax.f32 %v805_v55, 0.0  ;;  %v793_v60 = vadd.f32 %v785_v57, %v741_v56 }
 0x2a0   : > { %v715_v61 = vpop.permute.xlu1 %714  ;;  %v762_v62 = vpop.permute.xlu0 %761 }
 0x2a1   : > { %v740_v63 = vmul.f32 %v735_v27, %v715_v61  ;;  %v784_v0 = vmul.f32 %v779_v28, %v762_v62  ;;  %1255 = vmatprep.mubr.msk.f32.mxu1 %vm548_vm1, %v813_v58  ;;  %v808_v2 = vadd.f32 %v1120_v34, %v793_v60 }
 0x2a2   : > { %1256 = vmatmul.mubr.msk.f32.gmra.mrb[10].mxu1 %vm548_vm1, %v814_v59 }
 0x2a3   : > { %v792_v1 = vadd.f32 %v784_v0, %v740_v63  ;;  %v816_v10 = vmax.f32 %v808_v2, 0.0 }
 0x2a4   : > { %v725_v3 = vpop.permute.xlu1 %724  ;;  %v770_v4 = vpop.permute.xlu0 %769 }
 0x2a5   : > { %v807_v5 = vadd.f32 %v1120_v34, %v792_v1  ;;  %v742_v6 = vmul.f32 %v735_v27, %v725_v3  ;;  %v786_v7 = vmul.f32 %v779_v28, %v770_v4 }
 0x2a7   : > { %v815_v8 = vmax.f32 %v807_v5, 0.0  ;;  %v794_v9 = vadd.f32 %v786_v7, %v742_v6 }
 0x2a8   : > { %v730_v11 = vpop.permute.xlu1 %729  ;;  %v774_v12 = vpop.permute.xlu0 %773 }
 0x2a9   : > { %v809_v13 = vadd.f32 %v1120_v34, %v794_v9  ;;  %v743_v14 = vmul.f32 %v735_v27, %v730_v11  ;;  %v787_v15 = vmul.f32 %v779_v28, %v774_v12  ;;  %1258 = vmatprep.mubr.msk.f32.mxu1 %vm548_vm1, %v815_v8 }
 0x2aa   : > { %1259 = vmatmul.mubr.msk.f32.gmra.mrb[12].mxu1 %vm548_vm1, %v816_v10 }
 0x2ab   : > { %v817_v16 = vmax.f32 %v809_v13, 0.0  ;;  %v795_v17 = vadd.f32 %v787_v15, %v743_v14 }
 0x2ad   : > { %v810_v18 = vadd.f32 %v1120_v34, %v795_v17  ;;  %1261 = vmatprep.mubr.msk.f32.mxu1 %vm548_vm1, %v817_v16 }
 0x2af   : > { %v818_v19 = vmax.f32 %v810_v18, 0.0 }
 0x2b1   : > { %1262 = vmatmul.mubr.msk.f32.gmra.mrb[14].mxu1 %vm548_vm1, %v818_v19 }
 0x36d   : > { %v1254_v21 = vpop.f32.mrb[8].mxu1 }
 0x36e   : > { %v928_v22 = vadd.f32 %v1254_v21, %v1121_v20  ;;  %v922_v23 = vpop.f32.mrb[9].mxu1 }
 0x36f   : > { %v923_v24 = vadd.f32 %v1121_v20, %v922_v23 }
 0x370   : > { %v962_v25 = vmax.f32 %v928_v22, 0.0 }
 0x371   : > { %v961_v26 = vmax.f32 %v923_v24, 0.0 }
 0x372   : > { %970 = vst [vmem:[%s385_s23 + $0x8] sm:$0xff] %v962_v25 }
 0x373   : > { %969 = vst [vmem:[%s385_s23] sm:$0xff] %v961_v26 }
 0x375   : > { %v1257_v27 = vpop.f32.mrb[10].mxu1 }
 0x376   : > { %v938_v28 = vadd.f32 %v1257_v27, %v1121_v20  ;;  %v932_v29 = vpop.f32.mrb[11].mxu1 }
 0x377   : > { %v933_v30 = vadd.f32 %v1121_v20, %v932_v29 }
 0x378   : > { %v964_v31 = vmax.f32 %v938_v28, 0.0 }
 0x379   : > { %v963_v32 = vmax.f32 %v933_v30, 0.0 }
 0x37a   : > { %972 = vst [vmem:[%s385_s23 + $0x18] sm:$0xff] %v964_v31 }
 0x37b   : > { %971 = vst [vmem:[%s385_s23 + $0x10] sm:$0xff] %v963_v32 }
 0x37d   : > { %v1260_v33 = vpop.f32.mrb[12].mxu1 }
 0x37e   : > { %v948_v34 = vadd.f32 %v1260_v33, %v1121_v20  ;;  %v942_v35 = vpop.f32.mrb[13].mxu1 }
 0x37f   : > { %v943_v36 = vadd.f32 %v1121_v20, %v942_v35 }
 0x380   : > { %v966_v37 = vmax.f32 %v948_v34, 0.0 }
 0x381   : > { %v965_v38 = vmax.f32 %v943_v36, 0.0 }
 0x382   : > { %974 = vst [vmem:[%s385_s23 + $0x28] sm:$0xff] %v966_v37 }
 0x383   : > { %973 = vst [vmem:[%s385_s23 + $0x20] sm:$0xff] %v965_v38 }
 0x384   : > { %v1263_v39 = vpop.f32.mrb[14].mxu1 }
 0x385   : > { %v958_v40 = vadd.f32 %v1263_v39, %v1121_v20  ;;  %v952_v41 = vpop.f32.mrb[15].mxu1 }
 0x386   : > { %v953_v42 = vadd.f32 %v1121_v20, %v952_v41 }
 0x387   : > { %v968_v43 = vmax.f32 %v958_v40, 0.0 }
 0x388   : > { %v967_v44 = vmax.f32 %v953_v42, 0.0 }
 0x389   : > { %976 = vst [vmem:[%s385_s23 + $0x38] sm:$0xff] %v968_v43 }
 0x38a   : > { %975 = vst [vmem:[%s385_s23 + $0x30] sm:$0xff] %v967_v44 }
 0x38b   : > { %1404 = shalt.err (!%p1401_p3)
}
 0x38c   : > { %s1405_s29 = scalar_lea.hbm %s1776_s20, 1024  ;;  %s1409_s22 = scalar_lea.hbm %s1829_s10, 4096 }
 0x38d   : > { %p1406_p4 = scmp.ne.s32.totalorder %s1776_s20, %s1405_s29  ;;  %p1410_p2 = scmp.lt.u32.totalorder %s1776_s20, %s1829_s10 }
 0x38e   : > { %p1411_p7 = scmp.lt.u32.totalorder %s1409_s22, %s1405_s29  ;;  %p1413_p10 = scmp.lt.u32.totalorder %s1405_s29, %s1776_s20 }
 0x38f   : > { %p1407_p5 = pnand %p1406_p4, %p1839_p11 }
 0x390   : > { %p1412_p6 = por %p1411_p7, %p1410_p2 }
 0x391   : > { %p1408_p0 = pneg %p1407_p5 }
 0x392   : > { %p1414_p12 = por %p1413_p10, %p1412_p6 }
 0x394   : > { %p1415_p8 = pnand %p1414_p12, %p1408_p0 }
 0x396   : > { %1418 = shalt.err (!%p1415_p8)
}
 0x397   : > { %s1465_s27 = smov 128   ;;  %s1466_s11 = smov 8  }
 0x398   : > { %1306 = dma.vmem_to_hbm [thread:$0]  (%p1839_p11), %s1771_s24, 1024, %s1776_s20, %s983_s21, %s1465_s27, %s1465_s27, %s1466_s11  }
 0x399 PF: > { %p1317_p9 = scmp.ge.s32.totalorder %s1457_s16, 2  ;;  %s1023_s30 = sand.u32 1, %s1445_s13  }
 0x39a   : > { %p1840_p13 = scmp.ne.s32.totalorder %s1836_s26, 0  ;;  %s1024_s29 = scalar_lea.sflag [#allocation4], %s1023_s30 }
 0x39c   : > { %p1313_p1 = pnand %p1317_p9, %p1840_p13 }
 0x39e   : > { %1440 = dma.done.wait (!%p1313_p1), %s1024_s29, 1024  }
 0x39f   : > { %1442 = vsyncadd (!%p1313_p1), %s1024_s29, 4294966272  ;;  %s1841_s23 = sld [smem:[#allocation8_spill]]  ;;  %p24_p3 = scmp.ge.s32.totalorder %s1547_s19, 6  }
 0x3a0   : > { %s1842_s13 = smov %s1449_s14  ;;  %s1843_s14 = smov %s1453_s15 }
 0x3a1   : > { %s1845_s16 = smov %s1547_s19  ;;  %26 = sbr.rel (!%p24_p3) target bundleno = 5 (0x5), region = 113 }
 0x3a5   : > { %s1844_s15 = smov %s1841_s23 }
 0x3a8   :  { %1029 = vsyncpa [#allocation3], 1 }
 0x3a9   :  { %1031 = vsyncpa [#allocation3 + $0x1], 1 }
 0x3aa   :  { %1032 = vsyncpa [#allocation4], 1 }
 0x3ab   :  { %1034 = vsyncpa [#allocation4 + $0x1], 1 }

// kernel: tpu_custom_call.1
= control target key start
LH: loop header
LB: loop body
LE: loop exit
PB: predicated region body
PF: predicated region fallthrough
CT: control target
= control target key end

     0   :  { %16 = vsyncpa [#allocation3], 0  ;;  %s1819_s0 = inlined_call_operand.hbm [shape: f32[256,128], index: 0, kind: input, shape index: {}]   ;;  %s1820_s1 = inlined_call_operand.vmem [shape: f32[128,20], index: 1, kind: input, shape index: {}]   ;;  %s1821_s2 = inlined_call_operand.vmem [shape: f32[1,20], index: 2, kind: input, shape index: {}]   ;;  %s1822_s3 = inlined_call_operand.vmem [shape: f32[20,2], index: 3, kind: input, shape index: {}]   ;;  %s1823_s4 = inlined_call_operand.vmem [shape: f32[1,2], index: 4, kind: input, shape index: {}]   ;;  %s1824_s5 = inlined_call_operand.vmem [shape: f32[2,20], index: 5, kind: input, shape index: {}]   ;;  %s1825_s6 = inlined_call_operand.vmem [shape: f32[1,20], index: 6, kind: input, shape index: {}]   ;;  %s1826_s7 = inlined_call_operand.vmem [shape: f32[20,128], index: 7, kind: input, shape index: {}]   ;;  %s1827_s8 = inlined_call_operand.vmem [shape: f32[1,128], index: 8, kind: input, shape index: {}]   ;;  %s1828_s9 = inlined_call_operand.vmem [shape: f32[256,2], index: 9, kind: output, shape index: {0}]   ;;  %s1829_s10 = inlined_call_operand.hbm [shape: f32[256,128], index: 10, kind: output, shape index: {1}]  }
   0x1   :  { %18 = vsyncpa [#allocation3 + $0x1], 0 }
   0x2   :  { %19 = vsyncpa [#allocation4], 0 }
   0x3   :  { %21 = vsyncpa [#allocation4 + $0x1], 0  ;;  %s1522_s13 = smov 0   ;;  %s1524_s14 = smov 0  }
   0x4   :  { %s1526_s15 = smov 0   ;;  %s1528_s16 = smov 0  }
   0x5 LB: > { %s1543_s17 = sadd.s32 4294967295, %s1457_s16   ;;  %s1098_s18 = sadd.s32 4294967294, %s1457_s16   ;;  %s1457_s16 = sphi %s1528_s16, %s1845_s16   ;;  %s1453_s15 = sphi %s1526_s15, %s1844_s15   ;;  %s1449_s14 = sphi %s1524_s14, %s1843_s14   ;;  %s1445_s13 = sphi %s1522_s13, %s1842_s13  }
   0x6   : > { %s1547_s19 = sadd.s32 1, %s1457_s16   ;;  %s34_s20 = sadd.s32 1, %s1453_s15 }
   0x7   : > { %s31_s21 = ssub.s32 %s1457_s16, %s1547_s19  ;;  %p41_p0 = scmp.ne.s32.totalorder %s1453_s15, %s1449_s14 }
   0x8   : > { %p32_p1 = scmp.eq.s32.totalorder %s31_s21, 0  ;;  %p42_p2 = scmp.eq.s32.totalorder %s1457_s16, 0 }
   0x9   : > { %p47_p3 = scmp.ne.s32.totalorder %s1449_s14, %s1445_s13  ;;  %p48_p4 = scmp.eq.s32.totalorder %s1543_s17, 0 }
   0xa   : > { %s1559_s22 = scalar_select %p32_p1, %s1453_s15, %s34_s20  }
   0xb   : > { %p1561_p5 = por %p42_p2, %p41_p0  ;;  %p1565_p6 = por %p48_p4, %p47_p3 }
   0xc   : > { %1832 = sst [smem:[#allocation8_spill]] %s1559_s22  ;;  %p265_p7 = scmp.eq.s32.totalorder %s1543_s17, 3 }
   0xd   : > { %p271_p8 = scmp.eq.s32.totalorder %s1098_s18, 3  ;;  %p1316_p9 = scmp.lt.s32.totalorder %s1457_s16, 4 }
   0xe   : > { %p1571_p10 = por %p265_p7, %p41_p0  ;;  %s315_s27 = sand.u32 1, %s1453_s15  }
   0xf   : > { %p1575_p11 = por %p271_p8, %p47_p3  ;;  %s1136_s28 = sshll.u32 %s1457_s16, 10 }
  0x10   : > { %s1835_s25 = scalar_select %p1571_p10, 1, 0 }
  0x11   : > { %s1836_s26 = scalar_select %p1575_p11, 1, 0 }
  0x12   : > { %s1101_s29 = sshll.u32 %s315_s27, 6  ;;  %s1584_s12 = scalar_lea.hbm %s1819_s0, %s1136_s28 }
  0x13   : > { %s319_s18 = scalar_lea.vmem [#allocation2], %s1101_s29  ;;  %p1588_p12 = pnand %p1316_p9, %p1561_p5 }
  0x14   : > { %s326_s20 = sshll.u32 %s319_s18, 4  ;;  %s1594_s22 = scalar_lea.sflag [#allocation3], %s315_s27  ;;  %s1592_s20 = int_to_ptr.vmem [resolvable:$true] %s326_s20 }
  0x15   : > { %s1361_s30 = scalar_lea.hbm %s1584_s12, 1024  ;;  %p1363_p0 = pneg %p1588_p12 }
  0x16   : > { %p1362_p13 = scmp.ne.s32.totalorder %s1584_s12, %s1361_s30  ;;  %s1366_s29 = scalar_lea.hbm %s1819_s0, 4096 }
  0x17   : > { %p1367_p3 = scmp.lt.u32.totalorder %s1584_s12, %s1819_s0  ;;  %p1368_p4 = scmp.lt.u32.totalorder %s1366_s29, %s1361_s30 }
  0x18   : > { %p1364_p1 = pnand %p1363_p0, %p1362_p13  ;;  %p1370_p7 = scmp.lt.u32.totalorder %s1361_s30, %s1584_s12 }
  0x19   : > { %p1369_p5 = por %p1368_p4, %p1367_p3 }
  0x1a   : > { %p1365_p2 = pneg %p1364_p1 }
  0x1b   : > { %p1371_p8 = por %p1370_p7, %p1369_p5 }
  0x1d   : > { %p1372_p9 = pnand %p1371_p8, %p1365_p2 }
  0x1f   : > { %1375 = shalt.err (!%p1372_p9)
}
  0x20   : > { %s1376_s27 = scalar_lea.vmem %s1592_s20, 1024  ;;  %s1459_s28 = smov [#allocation2]  }
  0x21   : > { %p1377_p13 = scmp.ne.s32.totalorder %s1592_s20, %s1376_s27  ;;  %s1381_s23 = sshll.u32 %s1459_s28, 4  ;;  %s1382_s23 = int_to_ptr.vmem [resolvable:$false] %s1381_s23 }
  0x22   : > { %s1383_s11 = scalar_lea.vmem %s1382_s23, 2048  ;;  %p1384_p10 = scmp.lt.s32.totalorder %s1592_s20, %s1382_s23 }
  0x23   : > { %p1379_p1 = pnand %p1377_p13, %p1363_p0  ;;  %p1385_p3 = scmp.lt.s32.totalorder %s1383_s11, %s1376_s27 }
  0x25   : > { %p1380_p11 = pneg %p1379_p1  ;;  %p1386_p4 = por %p1385_p3, %p1384_p10 }
  0x27   : > { %p1387_p5 = pnand %p1386_p4, %p1380_p11 }
  0x29   : > { %1390 = shalt.err (!%p1387_p5)
}
  0x2a   : > { %s1460_s30 = smov 128   ;;  %s1461_s29 = smov 8  }
  0x2b   : > { %1311 = dma.hbm_to_vmem [thread:$0]  (!%p1588_p12), %s1584_s12, 1024, %s1592_s20, %s1594_s22, %s1460_s30, %s1460_s30, %s1461_s29  }
  0x2c   : > { %p1104_p0 = scmp.ge.s32.totalorder %s1457_s16, 1  ;;  %p334_p2 = scmp.lt.s32.totalorder %s1457_s16, 5 }
  0x2e   : > { %p335_p7 = pnand %p1104_p0, %p334_p2 }
  0x2f   : > { %s1625_s18 = sand.u32 (!%p335_p7), 1, %s1449_s14  }
  0x30   : > { %338 = sbr.rel (%p335_p7) target bundleno = 921 (0x399), region = 56  ;;  %s1831_s27 = sshll.u32 (!%p335_p7), %s1625_s18, 6 }
  0x31   : > { %s341_s28 = scalar_lea.sflag (!%p335_p7), [#allocation3], %s1625_s18  ;;  %s1631_s23 = scalar_lea.vmem (!%p335_p7), [#allocation2], %s1831_s27 }
  0x37   : > { %1436 = dma.done.wait (%p1565_p6), %s341_s28, 1024  }
  0x38   : > { %1438 = vsyncadd (%p1565_p6), %s341_s28, 4294966272  ;;  %v402_v0 = vld [vmem:[%s1820_s1] sm:$0xff]  ;;  %v403_v1 = vld [vmem:[%s1820_s1 + $0x8] sm:$0xff]  ;;  %vm573_vm0 = vcmask 1043456   ;;  %vm548_vm1 = vcmask 162816   ;;  %v1462_v61 = vmov 0  }
  0x39   : > { %v404_v2 = vld [vmem:[%s1820_s1 + $0x10] sm:$0xff]  ;;  %v1264_v3 = vpack.c.bf16 %v403_v1, %v402_v0  ;;  %v405_v4 = vld [vmem:[%s1820_s1 + $0x18] sm:$0xff]  ;;  %v406_v6 = vld [vmem:[%s1820_s1 + $0x20] sm:$0xff]  ;;  %1356 = vset.pattern.permute.xlu1 %v1462_v61  ;;  %1358 = vset.pattern.permute.xlu0 %v1462_v61  ;;  %s1107_s28 = sshll.u32 %s1543_s17, 3  ;;  %vm682_vm2 = vcmask 15360   ;;  %s1838_s29 = sshll.u32 %s1625_s18, 6 }
  0x3a   : > { %v1268_v5 = vpack.c.bf16 %v405_v4, %v404_v2  ;;  %v407_v7 = vld [vmem:[%s1820_s1 + $0x28] sm:$0xff]  ;;  %v394_v9 = vld [vmem:[%s1631_s23] sm:$0xff]  ;;  %v408_v10 = vld [vmem:[%s1820_s1 + $0x30] sm:$0xff]  ;;  %p388_p6 = scmp.lt.s32.totalorder %s1107_s28, 31  ;;  %s983_s21 = scalar_lea.sflag [#allocation4], %s1625_s18 }
  0x3b   : > { %1265 = vmatprep.subr.bf16.mxu0 %v1264_v3  ;;  %v1272_v8 = vpack.c.bf16 %v407_v7, %v406_v6  ;;  %v409_v11 = vld [vmem:[%s1820_s1 + $0x38] sm:$0xff]  ;;  %1216 = vmatprep.mubr.f32.mxu0 %v394_v9  ;;  %v410_v13 = vld [vmem:[%s1820_s1 + $0x40] sm:$0xff]  ;;  %v411_v14 = vld [vmem:[%s1820_s1 + $0x48] sm:$0xff]  ;;  %v1463_v7 = vmov 1   ;;  %p1839_p11 = scmp.ne.s32.totalorder %s1835_s25, 0 }
  0x3c   : > { %1267 = vmatpush3.bf16.msra.mxu0 %v1264_v3  ;;  %v1276_v12 = vpack.c.bf16 %v409_v11, %v408_v10  ;;  %v1280_v15 = vpack.c.bf16 %v411_v14, %v410_v13  ;;  %v412_v16 = vld [vmem:[%s1820_s1 + $0x50] sm:$0xff]  ;;  %v413_v17 = vld [vmem:[%s1820_s1 + $0x58] sm:$0xff]  ;;  %v414_v19 = vld [vmem:[%s1820_s1 + $0x60] sm:$0xff]  ;;  %s1847_s28 = smov (!%p388_p6, %s1107_s28), 31 }
  0x3d   : > { %1269 = vmatprep.subr.bf16.mxu0 %v1268_v5  ;;  %v1284_v18 = vpack.c.bf16 %v413_v17, %v412_v16  ;;  %v415_v20 = vld [vmem:[%s1820_s1 + $0x68] sm:$0xff]  ;;  %v416_v22 = vld [vmem:[%s1820_s1 + $0x70] sm:$0xff]  ;;  %v417_v23 = vld [vmem:[%s1820_s1 + $0x78] sm:$0xff]  ;;  %s1108_s22 = sshll.u32 %s1847_s28, 3  ;;  %s1137_s28 = sshll.u32 %s1543_s17, 10 }
  0x3e   : > { %v1288_v21 = vpack.c.bf16 %v415_v20, %v414_v19  ;;  %v1292_v24 = vpack.c.bf16 %v417_v23, %v416_v22  ;;  %v395_v25 = vld [vmem:[%s1631_s23 + $0x8] sm:$0xff]  ;;  %v396_v26 = vld [vmem:[%s1631_s23 + $0x10] sm:$0xff]  ;;  %v397_v27 = vld [vmem:[%s1631_s23 + $0x18] sm:$0xff]  ;;  %s1722_s11 = scalar_lea.vmem %s1828_s9, %s1108_s22  ;;  %v732_v20 = vlaneseq  ;;  %s1776_s20 = scalar_lea.hbm %s1829_s10, %s1137_s28 }
  0x3f   : > { %v398_v28 = vld [vmem:[%s1631_s23 + $0x20] sm:$0xff]  ;;  %v399_v29 = vld [vmem:[%s1631_s23 + $0x28] sm:$0xff]  ;;  %v400_v30 = vld [vmem:[%s1631_s23 + $0x30] sm:$0xff]  ;;  %s1464_s17 = smov [#allocation5]  }
  0x40   : > { %1271 = vmatpush3.bf16.msra.mxu0 %v1268_v5  ;;  %v401_v31 = vld [vmem:[%s1631_s23 + $0x38] sm:$0xff]  ;;  %v538_v32 = vld [vmem:[%s1822_s3] sm:$0xff]  ;;  %v539_v33 = vld [vmem:[%s1822_s3 + $0x8] sm:$0xff]  ;;  %s385_s23 = scalar_lea.vmem [#allocation5], %s1838_s29 }
  0x41   : > { %1273 = vmatprep.subr.bf16.mxu0 %v1272_v8  ;;  %v1296_v34 = vpack.c.bf16 %v539_v33, %v538_v32  ;;  %v540_v35 = vld [vmem:[%s1822_s3 + $0x10] sm:$0xf]  ;;  %v1109_v36 = vld [vmem:[%s1821_s2] ss:$0 sm:$0xff]  ;;  %s1000_s24 = sshll.u32 %s385_s23, 4  ;;  %s1771_s24 = int_to_ptr.vmem [resolvable:$true] %s1000_s24 }
  0x42   : > { %v1110_v62 = vld [vmem:[%s1823_s4] ss:$0 sm:$0xff]  ;;  %v821_v19 = vld [vmem:[%s1826_s7 + $0x10] sm:$0xf]  ;;  %s1391_s27 = scalar_lea.vmem %s1771_s24, 1024 }
  0x43   : > { %1297 = vmatprep.subr.bf16.mxu1 %v1296_v34  ;;  %v819_v11 = vld [vmem:[%s1826_s7] sm:$0xff]  ;;  %p1392_p10 = scmp.ne.s32.totalorder %s1771_s24, %s1391_s27 }
  0x44   : > { %1275 = vmatpush3.bf16.msra.mxu0 %v1272_v8  ;;  %1299 = vmatpush3.bf16.msra.mxu1 %v1296_v34  ;;  %v1120_v34 = vld [vmem:[%s1825_s6] ss:$0 sm:$0xff] }
  0x45   : > { %1277 = vmatprep.subr.bf16.mxu0 %v1276_v12  ;;  %1232 = vmatprep.subr.msk.mxu1 %vm573_vm0, %v540_v35  ;;  %p1393_p12 = pnand %p1392_p10, %p1839_p11 }
  0x47   : > { %p1394_p8 = pneg %p1393_p12 }
  0x48   : > { %1279 = vmatpush3.bf16.msra.mxu0 %v1276_v12  ;;  %1233 = vmatpush3.msk.msra.mxu1 %vm573_vm0, %v540_v35  ;;  %v820_v12 = vld [vmem:[%s1826_s7 + $0x8] sm:$0xff] }
  0x49   : > { %1281 = vmatprep.subr.bf16.mxu0 %v1280_v15  ;;  %v1300_v14 = vpack.c.bf16 %v820_v12, %v819_v11 }
  0x4b   : > { %1301 = vmatprep.subr.bf16.mxu1 %v1300_v14 }
  0x4c   : > { %1283 = vmatpush3.bf16.msra.mxu0 %v1280_v15 }
  0x4d   : > { %1285 = vmatprep.subr.bf16.mxu0 %v1284_v18 }
  0x50   : > { %1287 = vmatpush3.bf16.msra.mxu0 %v1284_v18 }
  0x51   : > { %1289 = vmatprep.subr.bf16.mxu0 %v1288_v21 }
  0x54   : > { %1291 = vmatpush3.bf16.msra.mxu0 %v1288_v21  ;;  %v733_v21 = vshrl.u32 %v732_v20, 7  ;;  %v1121_v20 = vld [vmem:[%s1827_s8] ss:$0 sm:$0xff] }
  0x55   : > { %1293 = vmatprep.subr.bf16.mxu0 %v1292_v24 }
  0x56   : > { %v734_v22 = vsub.s32 0, %v733_v21  ;;  %v778_v23 = vsub.s32 1, %v733_v21 }
  0x58   : > { %1295 = vmatpush3.bf16.msra.mxu0 %v1292_v24  ;;  %v691_v24 = vld [vmem:[%s1824_s5] sm:$0x3] }
  0x5b   : > { %1217 = vmatmul.mubr.f32.vlgmr.msra.gmra.mrb[0].mxu0 %v395_v25 }
  0x5c   : > { %1219 = vmatprep.mubr.f32.mxu0 %v396_v26 }
  0x5f   : > { %1220 = vmatmul.mubr.f32.gmra.mrb[2].mxu0 %v397_v27  ;;  %v735_v27 = vrot.slane %v691_v24, %v734_v22 }
  0x60   : > { %1222 = vmatprep.mubr.f32.mxu0 %v398_v28  ;;  %v779_v28 = vrot.slane %v691_v24, %v778_v23 }
  0x63   : > { %1223 = vmatmul.mubr.f32.gmra.mrb[4].mxu0 %v399_v29 }
  0x64   : > { %1225 = vmatprep.mubr.f32.mxu0 %v400_v30 }
  0x67   : > { %1226 = vmatmul.mubr.f32.gmra.mrb[6].mxu0 %v401_v31 }
 0x12e   : > { %v1218_v37 = vpop.f32.mrb[0].mxu0 }
 0x12f   : > { %v497_v38 = vadd.f32 %v1218_v37, %v1109_v36  ;;  %v491_v39 = vpop.f32.mrb[1].mxu0 }
 0x130   : > { %v492_v40 = vadd.f32 %v1109_v36, %v491_v39 }
 0x131   : > { %v531_v43 = vmax.f32 %v497_v38, 0.0 }
 0x132   : > { %v530_v41 = vmax.f32 %v492_v40, 0.0  ;;  %v1221_v42 = vpop.f32.mrb[2].mxu0 }
 0x133   : > { %v507_v44 = vadd.f32 %v1221_v42, %v1109_v36  ;;  %v501_v45 = vpop.f32.mrb[3].mxu0 }
 0x134   : > { %1234 = vmatprep.mubr.msk.f32.mxu1 %vm548_vm1, %v530_v41  ;;  %v502_v46 = vadd.f32 %v1109_v36, %v501_v45 }
 0x135   : > { %v533_v47 = vmax.f32 %v507_v44, 0.0  ;;  %1235 = vmatmul.mubr.msk.f32.vlgmr.msra.gmra.mrb[0].mxu1 %vm548_vm1, %v531_v43 }
 0x136   : > { %v532_v48 = vmax.f32 %v502_v46, 0.0  ;;  %v1224_v49 = vpop.f32.mrb[4].mxu0  ;;  %1303 = vmatpush3.bf16.msra.mxu1 %v1300_v14 }
 0x137   : > { %v517_v50 = vadd.f32 %v1224_v49, %v1109_v36  ;;  %v511_v51 = vpop.f32.mrb[5].mxu0  ;;  %1250 = vmatprep.subr.msk.mxu1 %vm573_vm0, %v821_v19 }
 0x138   : > { %1237 = vmatprep.mubr.msk.f32.mxu1 %vm548_vm1, %v532_v48  ;;  %v512_v52 = vadd.f32 %v1109_v36, %v511_v51 }
 0x139   : > { %1238 = vmatmul.mubr.msk.f32.gmra.mrb[2].mxu1 %vm548_vm1, %v533_v47  ;;  %v535_v53 = vmax.f32 %v517_v50, 0.0 }
 0x13a   : > { %v534_v54 = vmax.f32 %v512_v52, 0.0  ;;  %v1227_v55 = vpop.f32.mrb[6].mxu0  ;;  %1251 = vmatpush3.msk.msra.mxu1 %vm573_vm0, %v821_v19 }
 0x13b   : > { %v527_v56 = vadd.f32 %v1227_v55, %v1109_v36  ;;  %v521_v57 = vpop.f32.mrb[7].mxu0 }
 0x13c   : > { %1240 = vmatprep.mubr.msk.f32.mxu1 %vm548_vm1, %v534_v54  ;;  %v522_v58 = vadd.f32 %v1109_v36, %v521_v57 }
 0x13d   : > { %v537_v59 = vmax.f32 %v527_v56, 0.0  ;;  %1241 = vmatmul.mubr.msk.f32.gmra.mrb[4].mxu1 %vm548_vm1, %v535_v53 }
 0x13e   : > { %v536_v60 = vmax.f32 %v522_v58, 0.0 }
 0x140   : > { %1243 = vmatprep.mubr.msk.f32.mxu1 %vm548_vm1, %v536_v60 }
 0x141   : > { %1244 = vmatmul.mubr.msk.f32.gmra.mrb[6].mxu1 %vm548_vm1, %v537_v59 }
 0x208   : > { %v1236_v63 = vpop.f32.mrb[0].mxu1 }
 0x209   : > { %v649_v0 = vadd.f32 %v1236_v63, %v1110_v62  ;;  %v643_v1 = vpop.f32.mrb[1].mxu1 }
 0x20a   : > { %v644_v2 = vadd.f32 %v1110_v62, %v643_v1 }
 0x20b   : > { %684 = vst.msk [vmem:[%s1722_s11 + $0x8] sm:$0xff] %vm682_vm2, %v649_v0  ;;  %699 = vperm.xlu1 %1356, %v649_v0  }
 0x20c   : > { %683 = vst.msk [vmem:[%s1722_s11] sm:$0xff] %vm682_vm2, %v644_v2  ;;  %694 = vperm.xlu0 %1358, %v644_v2   ;;  %v1239_v3 = vpop.f32.mrb[2].mxu1 }
 0x20d   : > { %v659_v4 = vadd.f32 %v1239_v3, %v1110_v62  ;;  %v653_v5 = vpop.f32.mrb[3].mxu1 }
 0x20e   : > { %v654_v6 = vadd.f32 %v1110_v62, %v653_v5 }
 0x20f   : > { %1357 = vset.pattern.permute.xlu1 %v1463_v7  ;;  %686 = vst.msk [vmem:[%s1722_s11 + $0x18] sm:$0xff] %vm682_vm2, %v659_v4 }
 0x210   : > { %749 = vperm.xlu1 %1357, %v649_v0   ;;  %685 = vst.msk [vmem:[%s1722_s11 + $0x10] sm:$0xff] %vm682_vm2, %v654_v6  ;;  %1359 = vset.pattern.permute.xlu0 %v1463_v7  ;;  %v1242_v8 = vpop.f32.mrb[4].mxu1 }
 0x211   : > { %745 = vperm.xlu0 %1359, %v644_v2   ;;  %v669_v9 = vadd.f32 %v1242_v8, %v1110_v62  ;;  %v663_v10 = vpop.f32.mrb[5].mxu1 }
 0x212   : > { %v664_v13 = vadd.f32 %v1110_v62, %v663_v10 }
 0x213   : > { %688 = vst.msk [vmem:[%s1722_s11 + $0x28] sm:$0xff] %vm682_vm2, %v669_v9 }
 0x214   : > { %1360 = vset.pattern.permute.xlu1 %v1462_v61  ;;  %687 = vst.msk [vmem:[%s1722_s11 + $0x20] sm:$0xff] %vm682_vm2, %v664_v13  ;;  %v1245_v15 = vpop.f32.mrb[6].mxu1 }
 0x215   : > { %709 = vperm.xlu1 %1360, %v659_v4   ;;  %757 = vperm.xlu0 %1359, %v659_v4   ;;  %v679_v16 = vadd.f32 %v1245_v15, %v1110_v62  ;;  %v673_v17 = vpop.f32.mrb[7].mxu1 }
 0x216   : > { %v674_v18 = vadd.f32 %v1110_v62, %v673_v17 }
 0x217   : > { %690 = vst.msk [vmem:[%s1722_s11 + $0x38] sm:$0xff] %vm682_vm2, %v679_v16 }
 0x218   : > { %689 = vst.msk [vmem:[%s1722_s11 + $0x30] sm:$0xff] %vm682_vm2, %v674_v18  ;;  %s1395_s11 = sshll.u32 %s1464_s17, 4  ;;  %s1396_s11 = int_to_ptr.vmem [resolvable:$false] %s1395_s11 }
 0x219   : > { %704 = vperm.xlu1 %1360, %v654_v6   ;;  %753 = vperm.xlu0 %1359, %v654_v6   ;;  %s1397_s30 = scalar_lea.vmem %s1396_s11, 2048  ;;  %p1398_p9 = scmp.lt.s32.totalorder %s1771_s24, %s1396_s11 }
 0x21a   : > { %p1399_p13 = scmp.lt.s32.totalorder %s1397_s30, %s1391_s27 }
 0x21c   : > { %p1400_p1 = por %p1399_p13, %p1398_p9 }
 0x21d   : > { %719 = vperm.xlu1 %1360, %v669_v9   ;;  %765 = vperm.xlu0 %1359, %v669_v9  }
 0x21e   : > { %p1401_p3 = pnand %p1400_p1, %p1394_p8 }
 0x221   : > { %714 = vperm.xlu1 %1360, %v664_v13   ;;  %761 = vperm.xlu0 %1359, %v664_v13  }
 0x225   : > { %724 = vperm.xlu1 %1360, %v674_v18   ;;  %769 = vperm.xlu0 %1359, %v674_v18  }
 0x229   : > { %729 = vperm.xlu1 %1360, %v679_v16   ;;  %773 = vperm.xlu0 %1359, %v679_v16  }
 0x28a   : > { %v700_v25 = vpop.permute.xlu1 %699 }
 0x28b   : > { %v695_v26 = vpop.permute.xlu0 %694  ;;  %v737_v30 = vmul.f32 %v735_v27, %v700_v25 }
 0x28c   : > { %v736_v33 = vmul.f32 %v735_v27, %v695_v26 }
 0x28f   : > { %v750_v29 = vpop.permute.xlu1 %749 }
 0x290   : > { %v781_v31 = vmul.f32 %v779_v28, %v750_v29  ;;  %v746_v32 = vpop.permute.xlu0 %745 }
 0x291   : > { %v780_v35 = vmul.f32 %v779_v28, %v746_v32 }
 0x292   : > { %v789_v36 = vadd.f32 %v781_v31, %v737_v30 }
 0x293   : > { %v788_v37 = vadd.f32 %v780_v35, %v736_v33 }
 0x294   : > { %v804_v38 = vadd.f32 %v1120_v34, %v789_v36  ;;  %v710_v39 = vpop.permute.xlu1 %709  ;;  %v758_v40 = vpop.permute.xlu0 %757 }
 0x295   : > { %v803_v41 = vadd.f32 %v1120_v34, %v788_v37  ;;  %v739_v42 = vmul.f32 %v735_v27, %v710_v39  ;;  %v783_v43 = vmul.f32 %v779_v28, %v758_v40 }
 0x296   : > { %v812_v45 = vmax.f32 %v804_v38, 0.0 }
 0x297   : > { %v811_v44 = vmax.f32 %v803_v41, 0.0  ;;  %v791_v46 = vadd.f32 %v783_v43, %v739_v42 }
 0x298   : > { %v705_v47 = vpop.permute.xlu1 %704  ;;  %v754_v48 = vpop.permute.xlu0 %753 }
 0x299   : > { %v738_v49 = vmul.f32 %v735_v27, %v705_v47  ;;  %v782_v50 = vmul.f32 %v779_v28, %v754_v48  ;;  %1252 = vmatprep.mubr.msk.f32.mxu1 %vm548_vm1, %v811_v44  ;;  %v806_v52 = vadd.f32 %v1120_v34, %v791_v46 }
 0x29a   : > { %1253 = vmatmul.mubr.msk.f32.vlgmr.msra.gmra.mrb[8].mxu1 %vm548_vm1, %v812_v45 }
 0x29b   : > { %v790_v51 = vadd.f32 %v782_v50, %v738_v49  ;;  %v814_v59 = vmax.f32 %v806_v52, 0.0 }
 0x29c   : > { %v720_v53 = vpop.permute.xlu1 %719  ;;  %v766_v54 = vpop.permute.xlu0 %765 }
 0x29d   : > { %v805_v55 = vadd.f32 %v1120_v34, %v790_v51  ;;  %v741_v56 = vmul.f32 %v735_v27, %v720_v53  ;;  %v785_v57 = vmul.f32 %v779_v28, %v766_v54 }
 0x29f   : > { %v813_v58 = vmax.f32 %v805_v55, 0.0  ;;  %v793_v60 = vadd.f32 %v785_v57, %v741_v56 }
 0x2a0   : > { %v715_v61 = vpop.permute.xlu1 %714  ;;  %v762_v62 = vpop.permute.xlu0 %761 }
 0x2a1   : > { %v740_v63 = vmul.f32 %v735_v27, %v715_v61  ;;  %v784_v0 = vmul.f32 %v779_v28, %v762_v62  ;;  %1255 = vmatprep.mubr.msk.f32.mxu1 %vm548_vm1, %v813_v58  ;;  %v808_v2 = vadd.f32 %v1120_v34, %v793_v60 }
 0x2a2   : > { %1256 = vmatmul.mubr.msk.f32.gmra.mrb[10].mxu1 %vm548_vm1, %v814_v59 }
 0x2a3   : > { %v792_v1 = vadd.f32 %v784_v0, %v740_v63  ;;  %v816_v10 = vmax.f32 %v808_v2, 0.0 }
 0x2a4   : > { %v725_v3 = vpop.permute.xlu1 %724  ;;  %v770_v4 = vpop.permute.xlu0 %769 }
 0x2a5   : > { %v807_v5 = vadd.f32 %v1120_v34, %v792_v1  ;;  %v742_v6 = vmul.f32 %v735_v27, %v725_v3  ;;  %v786_v7 = vmul.f32 %v779_v28, %v770_v4 }
 0x2a7   : > { %v815_v8 = vmax.f32 %v807_v5, 0.0  ;;  %v794_v9 = vadd.f32 %v786_v7, %v742_v6 }
 0x2a8   : > { %v730_v11 = vpop.permute.xlu1 %729  ;;  %v774_v12 = vpop.permute.xlu0 %773 }
 0x2a9   : > { %v809_v13 = vadd.f32 %v1120_v34, %v794_v9  ;;  %v743_v14 = vmul.f32 %v735_v27, %v730_v11  ;;  %v787_v15 = vmul.f32 %v779_v28, %v774_v12  ;;  %1258 = vmatprep.mubr.msk.f32.mxu1 %vm548_vm1, %v815_v8 }
 0x2aa   : > { %1259 = vmatmul.mubr.msk.f32.gmra.mrb[12].mxu1 %vm548_vm1, %v816_v10 }
 0x2ab   : > { %v817_v16 = vmax.f32 %v809_v13, 0.0  ;;  %v795_v17 = vadd.f32 %v787_v15, %v743_v14 }
 0x2ad   : > { %v810_v18 = vadd.f32 %v1120_v34, %v795_v17  ;;  %1261 = vmatprep.mubr.msk.f32.mxu1 %vm548_vm1, %v817_v16 }
 0x2af   : > { %v818_v19 = vmax.f32 %v810_v18, 0.0 }
 0x2b1   : > { %1262 = vmatmul.mubr.msk.f32.gmra.mrb[14].mxu1 %vm548_vm1, %v818_v19 }
 0x36d   : > { %v1254_v21 = vpop.f32.mrb[8].mxu1 }
 0x36e   : > { %v928_v22 = vadd.f32 %v1254_v21, %v1121_v20  ;;  %v922_v23 = vpop.f32.mrb[9].mxu1 }
 0x36f   : > { %v923_v24 = vadd.f32 %v1121_v20, %v922_v23 }
 0x370   : > { %v962_v25 = vmax.f32 %v928_v22, 0.0 }
 0x371   : > { %v961_v26 = vmax.f32 %v923_v24, 0.0 }
 0x372   : > { %970 = vst [vmem:[%s385_s23 + $0x8] sm:$0xff] %v962_v25 }
 0x373   : > { %969 = vst [vmem:[%s385_s23] sm:$0xff] %v961_v26 }
 0x375   : > { %v1257_v27 = vpop.f32.mrb[10].mxu1 }
 0x376   : > { %v938_v28 = vadd.f32 %v1257_v27, %v1121_v20  ;;  %v932_v29 = vpop.f32.mrb[11].mxu1 }
 0x377   : > { %v933_v30 = vadd.f32 %v1121_v20, %v932_v29 }
 0x378   : > { %v964_v31 = vmax.f32 %v938_v28, 0.0 }
 0x379   : > { %v963_v32 = vmax.f32 %v933_v30, 0.0 }
 0x37a   : > { %972 = vst [vmem:[%s385_s23 + $0x18] sm:$0xff] %v964_v31 }
 0x37b   : > { %971 = vst [vmem:[%s385_s23 + $0x10] sm:$0xff] %v963_v32 }
 0x37d   : > { %v1260_v33 = vpop.f32.mrb[12].mxu1 }
 0x37e   : > { %v948_v34 = vadd.f32 %v1260_v33, %v1121_v20  ;;  %v942_v35 = vpop.f32.mrb[13].mxu1 }
 0x37f   : > { %v943_v36 = vadd.f32 %v1121_v20, %v942_v35 }
 0x380   : > { %v966_v37 = vmax.f32 %v948_v34, 0.0 }
 0x381   : > { %v965_v38 = vmax.f32 %v943_v36, 0.0 }
 0x382   : > { %974 = vst [vmem:[%s385_s23 + $0x28] sm:$0xff] %v966_v37 }
 0x383   : > { %973 = vst [vmem:[%s385_s23 + $0x20] sm:$0xff] %v965_v38 }
 0x384   : > { %v1263_v39 = vpop.f32.mrb[14].mxu1 }
 0x385   : > { %v958_v40 = vadd.f32 %v1263_v39, %v1121_v20  ;;  %v952_v41 = vpop.f32.mrb[15].mxu1 }
 0x386   : > { %v953_v42 = vadd.f32 %v1121_v20, %v952_v41 }
 0x387   : > { %v968_v43 = vmax.f32 %v958_v40, 0.0 }
 0x388   : > { %v967_v44 = vmax.f32 %v953_v42, 0.0 }
 0x389   : > { %976 = vst [vmem:[%s385_s23 + $0x38] sm:$0xff] %v968_v43 }
 0x38a   : > { %975 = vst [vmem:[%s385_s23 + $0x30] sm:$0xff] %v967_v44 }
 0x38b   : > { %1404 = shalt.err (!%p1401_p3)
}
 0x38c   : > { %s1405_s29 = scalar_lea.hbm %s1776_s20, 1024  ;;  %s1409_s22 = scalar_lea.hbm %s1829_s10, 4096 }
 0x38d   : > { %p1406_p4 = scmp.ne.s32.totalorder %s1776_s20, %s1405_s29  ;;  %p1410_p2 = scmp.lt.u32.totalorder %s1776_s20, %s1829_s10 }
 0x38e   : > { %p1411_p7 = scmp.lt.u32.totalorder %s1409_s22, %s1405_s29  ;;  %p1413_p10 = scmp.lt.u32.totalorder %s1405_s29, %s1776_s20 }
 0x38f   : > { %p1407_p5 = pnand %p1406_p4, %p1839_p11 }
 0x390   : > { %p1412_p6 = por %p1411_p7, %p1410_p2 }
 0x391   : > { %p1408_p0 = pneg %p1407_p5 }
 0x392   : > { %p1414_p12 = por %p1413_p10, %p1412_p6 }
 0x394   : > { %p1415_p8 = pnand %p1414_p12, %p1408_p0 }
 0x396   : > { %1418 = shalt.err (!%p1415_p8)
}
 0x397   : > { %s1465_s27 = smov 128   ;;  %s1466_s11 = smov 8  }
 0x398   : > { %1306 = dma.vmem_to_hbm [thread:$0]  (%p1839_p11), %s1771_s24, 1024, %s1776_s20, %s983_s21, %s1465_s27, %s1465_s27, %s1466_s11  }
 0x399 PF: > { %p1317_p9 = scmp.ge.s32.totalorder %s1457_s16, 2  ;;  %s1023_s30 = sand.u32 1, %s1445_s13  }
 0x39a   : > { %p1840_p13 = scmp.ne.s32.totalorder %s1836_s26, 0  ;;  %s1024_s29 = scalar_lea.sflag [#allocation4], %s1023_s30 }
 0x39c   : > { %p1313_p1 = pnand %p1317_p9, %p1840_p13 }
 0x39e   : > { %1440 = dma.done.wait (!%p1313_p1), %s1024_s29, 1024  }
 0x39f   : > { %1442 = vsyncadd (!%p1313_p1), %s1024_s29, 4294966272  ;;  %s1841_s23 = sld [smem:[#allocation8_spill]]  ;;  %p24_p3 = scmp.ge.s32.totalorder %s1547_s19, 6  }
 0x3a0   : > { %s1842_s13 = smov %s1449_s14  ;;  %s1843_s14 = smov %s1453_s15 }
 0x3a1   : > { %s1845_s16 = smov %s1547_s19  ;;  %26 = sbr.rel (!%p24_p3) target bundleno = 5 (0x5), region = 113 }
 0x3a5   : > { %s1844_s15 = smov %s1841_s23 }
 0x3a8   :  { %1029 = vsyncpa [#allocation3], 1 }
 0x3a9   :  { %1031 = vsyncpa [#allocation3 + $0x1], 1 }
 0x3aa   :  { %1032 = vsyncpa [#allocation4], 1 }
 0x3ab   :  { %1034 = vsyncpa [#allocation4 + $0x1], 1 }

</bundles_post_ra>
